<compile_context>
chip_gen: v7x
topology: tpu7x:2x2x1
jax: 0.10.0
libtpu: 0.0.40
codegen_flags: <defaults>
</compile_context>

<pallas_src>
import functools

import jax
import jax.numpy as jnp
from jax import lax
from jax.experimental import pallas as pl
from jax.experimental.pallas import tpu as pltpu


def _make_divisible(v, divisor, min_value=None):
    if min_value is None:
        min_value = divisor
    new_v = max(min_value, int(v + divisor / 2) // divisor * divisor)
    if new_v < 0.9 * v:
        new_v += divisor
    return new_v


def _exact_sigmoid(v):
    # exp -> EUP slot; exact f32 divide (only used on tiny (ATTN,1)/(MID,1)).
    return 1.0 / (1.0 + jnp.exp(-v))


def split_attn_kernel(x_ref, wg_ref, wfc1_ref, bfc1_ref, wfc2_ref, bfc2_ref,
                      out_ref, *, radix, H, W, ksize, padding):
    # x_ref   : (Bblk, G, C1g, n_lanes) bf16  zero-padded input, lane raster
    # wg_ref  : (G, T, C2, C1g)         bf16  per-group conv weight blocks
    # wfc1_ref: (ATTN, C2) f32, bfc1_ref: (ATTN, 1) f32
    # wfc2_ref: (MID, ATTN) f32, bfc2_ref: (MID, 1) f32
    # out_ref : (Bblk, C2, H*Wp)        bf16  lane-raster output
    Bblk = x_ref.shape[0]
    C2 = out_ref.shape[1]
    Wp = W + 2 * padding          # padded row width (lane stride of the raster)
    L = H * Wp                    # compute-raster length (includes pad columns)
    assert out_ref.shape[2] == L

    # Static tap offsets into the padded raster: output pixel q needs input
    # lane q + kh*Wp + kw for tap (kh, kw).  Zero padding -> no boundary masks.
    tap_offs = [kh * Wp + kw for kh in range(ksize) for kw in range(ksize)]

    # Pad columns (w >= W) are junk lanes; exclude them from the global pool.
    pos = lax.broadcasted_iota(jnp.int32, (C2, L), 1)
    col_ok = (pos % Wp) < W
    inv_hw = 1.0 / float(H * W)

    for b in range(Bblk):
        y_splits = []
        x_gap = None
        for r in range(radix):
            x_r = x_ref[b, r]                                   # (C1g, n_lanes) bf16
            acc = None
            for t, off in enumerate(tap_offs):
                tap = x_r[:, off:off + L]                        # (C1g, L) bf16
                part = jnp.dot(wg_ref[r, t], tap,
                               preferred_element_type=jnp.float32)   # (C2, L) f32
                acc = part if acc is None else acc + part
            # SiLU: exp + approx reciprocal both live on the EUP slot.
            y = acc * pl.reciprocal(1.0 + jnp.exp(-acc), approx=True)
            # Fused radix-sum for the global average pool (no re-read of y).
            x_gap = y if x_gap is None else x_gap + y
            # Attention-weighted-sum pass runs in bf16 (v6e/v7x fast path).
            y_splits.append(y.astype(jnp.bfloat16))

        # --- global average pool over the valid H*W lanes (f32) ---
        gap = jnp.sum(jnp.where(col_ok, x_gap, 0.0), axis=1,
                      keepdims=True) * inv_hw                    # (C2, 1) f32

        # --- fc1 -> SiLU -> fc2 on the pooled column vector (tiny, f32) ---
        a1 = jnp.dot(wfc1_ref[...], gap,
                     preferred_element_type=jnp.float32) + bfc1_ref[...]
        a1 = a1 * _exact_sigmoid(a1)
        a2 = jnp.dot(wfc2_ref[...], a1,
                     preferred_element_type=jnp.float32) + bfc2_ref[...]

        # --- rSoftMax (cardinality = 1): softmax over radix, EXACT divide ---
        if radix > 1:
            logits = [a2[r * C2:(r + 1) * C2, :] for r in range(radix)]
            m = logits[0]
            for r in range(1, radix):
                m = jnp.maximum(m, logits[r])
            exps = [jnp.exp(l - m) for l in logits]
            denom = exps[0]
            for r in range(1, radix):
                denom = denom + exps[r]
            attns = [(e / denom).astype(jnp.bfloat16) for e in exps]
        else:
            attns = [_exact_sigmoid(a2).astype(jnp.bfloat16)]

        # --- attention-weighted sum over radix splits (bf16, lane-dense) ---
        out = y_splits[0] * attns[0]
        for r in range(1, radix):
            out = out + y_splits[r] * attns[r]
        out_ref[b] = out.astype(out_ref.dtype)


def split_attn_forward(x_nchw, params, *, radix, ksize, padding, groups=1,
                       batch_block=1):
    wconv, wfc1, bfc1, wfc2, bfc2 = params
    assert groups == 1, "cardinality (groups) > 1 not implemented"
    B, C1, H, W = x_nchw.shape
    T = ksize * ksize
    MID = wconv.shape[2]
    C2 = MID // radix
    G = groups * radix            # conv group count (== radix for groups == 1)
    C1g = C1 // G
    MIDg = MID // G               # == C2 for groups == 1
    Hp, Wp = H + 2 * padding, W + 2 * padding
    L = H * Wp                    # in-kernel compute raster length

    assert B % batch_block == 0
    Bblk = batch_block

    # --- input: zero-pad, flatten to a lane raster, split channel groups ---
    # Lane length rounded up so every tap slice (start <= (k-1)*(Wp+1)) fits.
    max_off = (ksize - 1) * Wp + (ksize - 1)
    n_lanes = -(-max(Hp * Wp, max_off + L) // 128) * 128
    xp = jnp.pad(x_nchw, ((0, 0), (0, 0), (padding, padding), (padding, padding)))
    xf = xp.reshape(B, C1, Hp * Wp)
    xf = jnp.pad(xf, ((0, 0), (0, 0), (0, n_lanes - Hp * Wp)))
    x_in = xf.reshape(B, G, C1g, n_lanes).astype(jnp.bfloat16)

    # --- per-group conv weight blocks (the zero blocks are never multiplied) ---
    wg = jnp.stack(
        [jnp.transpose(
            wconv[:, g * C1g:(g + 1) * C1g, g * MIDg:(g + 1) * MIDg], (0, 2, 1))
         for g in range(G)], axis=0).astype(jnp.bfloat16)        # (G, T, C2, C1g)

    wfc1 = wfc1.astype(jnp.float32)
    wfc2 = wfc2.astype(jnp.float32)
    bfc1c = bfc1.reshape(-1, 1).astype(jnp.float32)
    bfc2c = bfc2.reshape(-1, 1).astype(jnp.float32)

    # --- explicit VMEM budget (default scoped limit: 16 MiB v5e / 32 MiB v6e) ---
    bytes_in = 2 * (Bblk * G * C1g * n_lanes * 2)        # double-buffered bf16 input
    bytes_out = 2 * (Bblk * C2 * L * 2)                  # double-buffered bf16 output
    bytes_w = 2 * (wg.size * 2 + (wfc1.size + wfc2.size + bfc1c.size + bfc2c.size) * 4)
    bytes_tmp = Bblk * (radix * C2 * L * 8 + 2 * C1g * L * 2)   # acc/y/taps headroom
    vmem_limit = int(min(max(bytes_in + bytes_out + bytes_w + bytes_tmp,
                             16 * 2 ** 20), 64 * 2 ** 20))

    kernel = functools.partial(split_attn_kernel, radix=radix, H=H, W=W,
                               ksize=ksize, padding=padding)
    out = pl.pallas_call(
        kernel,
        out_shape=jax.ShapeDtypeStruct((B, C2, L), jnp.bfloat16),
        grid_spec=pltpu.PrefetchScalarGridSpec(
            num_scalar_prefetch=0,
            grid=(B // Bblk,),
            in_specs=[
                pl.BlockSpec((Bblk, G, C1g, n_lanes), lambda i: (i, 0, 0, 0)),
                pl.BlockSpec(wg.shape, lambda i: (0, 0, 0, 0)),
                pl.BlockSpec(wfc1.shape, lambda i: (0, 0)),
                pl.BlockSpec(bfc1c.shape, lambda i: (0, 0)),
                pl.BlockSpec(wfc2.shape, lambda i: (0, 0)),
                pl.BlockSpec(bfc2c.shape, lambda i: (0, 0)),
            ],
            out_specs=pl.BlockSpec((Bblk, C2, L), lambda i: (i, 0, 0)),
        ),
        compiler_params=pltpu.CompilerParams(
            dimension_semantics=("parallel",),        # v7x: one TC per grid step
            vmem_limit_bytes=vmem_limit),
    )(x_in, wg, wfc1, bfc1c, wfc2, bfc2c)
    # Drop the Wp-W pad columns of the lane raster; output is already NCHW.
    return out.reshape(B, C2, H, Wp)[:, :, :, :W]


def init_params(key, c1, c2, radix, groups, ksize, rd_ratio=0.25, rd_divisor=8):
    mid = c2 * radix
    attn_chs = _make_divisible(c1 * radix * rd_ratio, min_value=32,
                               divisor=rd_divisor)
    g_total = groups * radix
    cin_g = c1 // g_total
    cout_g = mid // g_total
    k1, k2, k3, k4, k5 = jax.random.split(key, 5)

    # PyTorch grouped conv weight: (mid, c1 // g_total, k, k), bias=False.
    w_pt = 0.1 * jax.random.normal(k1, (mid, cin_g, ksize, ksize), jnp.float32)
    # Densified block-diagonal weight (T, C1, MID) used by the pure-JAX reference;
    # the Pallas wrapper re-extracts only the non-zero per-group blocks.
    w_full = jnp.zeros((ksize, ksize, c1, mid), jnp.float32)
    for g in range(g_total):
        wg = w_pt[g * cout_g:(g + 1) * cout_g]                  # (cout_g, cin_g, k, k)
        w_full = w_full.at[:, :, g * cin_g:(g + 1) * cin_g,
                           g * cout_g:(g + 1) * cout_g].set(
            jnp.transpose(wg, (2, 3, 1, 0)))
    wconv = w_full.reshape(ksize * ksize, c1, mid)              # (T, C1, MID)

    wfc1 = 0.1 * jax.random.normal(k2, (attn_chs, c2), jnp.float32)
    bfc1 = 0.1 * jax.random.normal(k3, (attn_chs,), jnp.float32)
    wfc2 = 0.1 * jax.random.normal(k4, (mid, attn_chs), jnp.float32)
    bfc2 = 0.1 * jax.random.normal(k5, (mid,), jnp.float32)
    return wconv, wfc1, bfc1, wfc2, bfc2


def reference_forward(x_nchw, params, *, radix, ksize, padding):
    """Pure-JAX f32 reference mirroring the PyTorch forward (groups=1, no norm)."""
    wconv, wfc1, bfc1, wfc2, bfc2 = params
    B, C1, H, W = x_nchw.shape
    MID = wconv.shape[2]
    C2 = MID // radix
    xp = jnp.pad(x_nchw, ((0, 0), (0, 0), (padding, padding), (padding, padding)))
    acc = jnp.zeros((B, MID, H, W), jnp.float32)
    for kh in range(ksize):
        for kw in range(ksize):
            acc = acc + jnp.einsum('bchw,cm->bmhw',
                                   xp[:, :, kh:kh + H, kw:kw + W],
                                   wconv[kh * ksize + kw],
                                   precision=jax.lax.Precision.HIGHEST)
    y = acc * jax.nn.sigmoid(acc)
    yr = y.reshape(B, radix, C2, H, W)
    gap = yr.sum(axis=1).mean(axis=(2, 3))                       # (B, C2)
    a1 = gap @ wfc1.T + bfc1
    a1 = a1 * jax.nn.sigmoid(a1)
    a2 = a1 @ wfc2.T + bfc2                                      # (B, MID)
    if radix > 1:
        attn = jax.nn.softmax(a2.reshape(B, radix, C2), axis=1)
    else:
        attn = jax.nn.sigmoid(a2).reshape(B, radix, C2)
    out = (yr * attn[:, :, :, None, None]).sum(axis=1)           # (B, C2, H, W)
    return out


if __name__ == "__main__":
    # Small config consistent with SplitAttn defaults:
    # c1 = c2 = 8, radix = 2, groups = 1, 3x3 conv pad 1, no norm layer.
    B, C1, H, W = 4, 8, 16, 16
    C2 = C1
    radix, groups, ksize, padding = 2, 1, 3, 1

    key = jax.random.PRNGKey(0)
    kx, kp = jax.random.split(key)
    x = jax.random.normal(kx, (B, C1, H, W), jnp.float32)
    params = init_params(kp, C1, C2, radix, groups, ksize)

    out = split_attn_forward(x, params, radix=radix, ksize=ksize,
                             padding=padding, groups=groups, batch_block=2)
    out = jax.block_until_ready(out)

    ref = reference_forward(x, params, radix=radix, ksize=ksize, padding=padding)
    assert out.shape == (B, C2, H, W), out.shape
    out_f32 = out.astype(jnp.float32)
    max_err = float(jnp.max(jnp.abs(out_f32 - ref)))
    # bf16 conv operands + bf16 activation path + bf16 output (f32 accumulation
    # and f32 gap/fc/softmax) -> looser tolerance than a pure-f32 path.
    assert jnp.allclose(out_f32, ref, rtol=4e-2, atol=2e-2), max_err

    print("KERNEL_OK")
</pallas_src>

<mosaic_0001>
module attributes {stable_mosaic.version = 11 : i64} {
  func.func @split_attn_kernel(%arg0: i32, %arg1: memref<2x2x4x384xbf16, #tpu.memory_space<vmem>>, %arg2: memref<2x9x8x4xbf16, #tpu.memory_space<vmem>>, %arg3: memref<32x8xf32, #tpu.memory_space<vmem>>, %arg4: memref<32x1xf32, #tpu.memory_space<vmem>>, %arg5: memref<16x32xf32, #tpu.memory_space<vmem>>, %arg6: memref<16x1xf32, #tpu.memory_space<vmem>>, %arg7: memref<2x8x288xbf16, #tpu.memory_space<vmem>>) attributes {dimension_semantics = [#tpu.dimension_semantics<parallel>], iteration_bounds = array<i64: 2>, scalar_prefetch = 0 : i64, scratch_operands = 0 : i64, tpu.core_type = #tpu.core_type<tc>, window_params = [{transform_indices = @transform_0, window_bounds = array<i64: 2, 2, 4, 384>}, {pipeline_mode = #tpu.pipeline_mode<synchronous>, transform_indices = @transform_1, window_bounds = array<i64: 2, 9, 8, 4>}, {pipeline_mode = #tpu.pipeline_mode<synchronous>, transform_indices = @transform_2, window_bounds = array<i64: 32, 8>}, {pipeline_mode = #tpu.pipeline_mode<synchronous>, transform_indices = @transform_3, window_bounds = array<i64: 32, 1>}, {pipeline_mode = #tpu.pipeline_mode<synchronous>, transform_indices = @transform_4, window_bounds = array<i64: 16, 32>}, {pipeline_mode = #tpu.pipeline_mode<synchronous>, transform_indices = @transform_5, window_bounds = array<i64: 16, 1>}, {transform_indices = @transform_6, window_bounds = array<i64: 2, 8, 288>}]} {
    %0 = tpu.iota {dimensions = array<i32: 1>} : vector<8x288xi32>
    %c18_i32 = arith.constant 18 : i32
    %c0_i32 = arith.constant 0 : i32
    %1 = arith.cmpi eq, %c18_i32, %c0_i32 : i32
    %c1_i32 = arith.constant 1 : i32
    %2 = arith.select %1, %c1_i32, %c18_i32 : i32
    %3 = vector.broadcast %2 : i32 to vector<8x288xi32>
    %4 = arith.remsi %0, %3 : vector<8x288xi32>
    %c0_i32_0 = arith.constant 0 : i32
    %5 = vector.broadcast %c0_i32_0 : i32 to vector<8x288xi32>
    %6 = arith.cmpi ne, %4, %5 : vector<8x288xi32>
    %c0_i32_1 = arith.constant 0 : i32
    %7 = vector.broadcast %c0_i32_1 : i32 to vector<8x288xi32>
    %8 = arith.cmpi slt, %4, %7 : vector<8x288xi32>
    %c0_i32_2 = arith.constant 0 : i32
    %9 = arith.cmpi slt, %2, %c0_i32_2 : i32
    %10 = vector.broadcast %9 : i1 to vector<8x288xi1>
    %11 = vector.broadcast %10 : vector<8x288xi1> to vector<8x288xi1>
    %12 = arith.xori %8, %11 : vector<8x288xi1>
    %13 = arith.andi %12, %6 : vector<8x288xi1>
    %14 = vector.broadcast %2 : i32 to vector<8x288xi32>
    %15 = arith.addi %4, %14 : vector<8x288xi32>
    %16 = arith.select %13, %15, %4 : vector<8x288xi1>, vector<8x288xi32>
    %c16_i32 = arith.constant 16 : i32
    %17 = vector.broadcast %c16_i32 : i32 to vector<8x288xi32>
    %18 = arith.cmpi slt, %16, %17 : vector<8x288xi32>
    %c0 = arith.constant 0 : index
    %c0_3 = arith.constant 0 : index
    %c0_4 = arith.constant 0 : index
    %c0_5 = arith.constant 0 : index
    %19 = vector.load %arg1[%c0, %c0_3, %c0_4, %c0_5] : memref<2x2x4x384xbf16, #tpu.memory_space<vmem>>, vector<1x1x4x384xbf16>
    %20 = vector.shape_cast %19 : vector<1x1x4x384xbf16> to vector<4x384xbf16>
    %21 = vector.extract_strided_slice %20 {offsets = [0, 0], sizes = [4, 288], strides = [1, 1]} : vector<4x384xbf16> to vector<4x288xbf16>
    %c0_6 = arith.constant 0 : index
    %c0_7 = arith.constant 0 : index
    %c0_8 = arith.constant 0 : index
    %c0_9 = arith.constant 0 : index
    %22 = vector.load %arg2[%c0_6, %c0_7, %c0_8, %c0_9] : memref<2x9x8x4xbf16, #tpu.memory_space<vmem>>, vector<1x1x8x4xbf16>
    %23 = vector.shape_cast %22 : vector<1x1x8x4xbf16> to vector<8x4xbf16>
    %cst = arith.constant dense<0.000000e+00> : vector<8x288xf32>
    %24 = tpu.matmul %23, %21, %cst {dimension_numbers = #tpu.dot_dimension_numbers<[1], [0], [0], [1], [0, 0, 1, 1], [], []>} : vector<8x4xbf16>, vector<4x288xbf16>, vector<8x288xf32> -> vector<8x288xf32>
    %25 = vector.extract_strided_slice %20 {offsets = [0, 1], sizes = [4, 288], strides = [1, 1]} : vector<4x384xbf16> to vector<4x288xbf16>
    %c0_10 = arith.constant 0 : index
    %c1 = arith.constant 1 : index
    %c0_11 = arith.constant 0 : index
    %c0_12 = arith.constant 0 : index
    %26 = vector.load %arg2[%c0_10, %c1, %c0_11, %c0_12] : memref<2x9x8x4xbf16, #tpu.memory_space<vmem>>, vector<1x1x8x4xbf16>
    %27 = vector.shape_cast %26 : vector<1x1x8x4xbf16> to vector<8x4xbf16>
    %cst_13 = arith.constant dense<0.000000e+00> : vector<8x288xf32>
    %28 = tpu.matmul %27, %25, %cst_13 {dimension_numbers = #tpu.dot_dimension_numbers<[1], [0], [0], [1], [0, 0, 1, 1], [], []>} : vector<8x4xbf16>, vector<4x288xbf16>, vector<8x288xf32> -> vector<8x288xf32>
    %29 = arith.addf %24, %28 : vector<8x288xf32>
    %30 = vector.extract_strided_slice %20 {offsets = [0, 2], sizes = [4, 288], strides = [1, 1]} : vector<4x384xbf16> to vector<4x288xbf16>
    %c0_14 = arith.constant 0 : index
    %c2 = arith.constant 2 : index
    %c0_15 = arith.constant 0 : index
    %c0_16 = arith.constant 0 : index
    %31 = vector.load %arg2[%c0_14, %c2, %c0_15, %c0_16] : memref<2x9x8x4xbf16, #tpu.memory_space<vmem>>, vector<1x1x8x4xbf16>
    %32 = vector.shape_cast %31 : vector<1x1x8x4xbf16> to vector<8x4xbf16>
    %cst_17 = arith.constant dense<0.000000e+00> : vector<8x288xf32>
    %33 = tpu.matmul %32, %30, %cst_17 {dimension_numbers = #tpu.dot_dimension_numbers<[1], [0], [0], [1], [0, 0, 1, 1], [], []>} : vector<8x4xbf16>, vector<4x288xbf16>, vector<8x288xf32> -> vector<8x288xf32>
    %34 = arith.addf %29, %33 : vector<8x288xf32>
    %35 = vector.extract_strided_slice %20 {offsets = [0, 18], sizes = [4, 288], strides = [1, 1]} : vector<4x384xbf16> to vector<4x288xbf16>
    %c0_18 = arith.constant 0 : index
    %c3 = arith.constant 3 : index
    %c0_19 = arith.constant 0 : index
    %c0_20 = arith.constant 0 : index
    %36 = vector.load %arg2[%c0_18, %c3, %c0_19, %c0_20] : memref<2x9x8x4xbf16, #tpu.memory_space<vmem>>, vector<1x1x8x4xbf16>
    %37 = vector.shape_cast %36 : vector<1x1x8x4xbf16> to vector<8x4xbf16>
    %cst_21 = arith.constant dense<0.000000e+00> : vector<8x288xf32>
    %38 = tpu.matmul %37, %35, %cst_21 {dimension_numbers = #tpu.dot_dimension_numbers<[1], [0], [0], [1], [0, 0, 1, 1], [], []>} : vector<8x4xbf16>, vector<4x288xbf16>, vector<8x288xf32> -> vector<8x288xf32>
    %39 = arith.addf %34, %38 : vector<8x288xf32>
    %40 = vector.extract_strided_slice %20 {offsets = [0, 19], sizes = [4, 288], strides = [1, 1]} : vector<4x384xbf16> to vector<4x288xbf16>
    %c0_22 = arith.constant 0 : index
    %c4 = arith.constant 4 : index
    %c0_23 = arith.constant 0 : index
    %c0_24 = arith.constant 0 : index
    %41 = vector.load %arg2[%c0_22, %c4, %c0_23, %c0_24] : memref<2x9x8x4xbf16, #tpu.memory_space<vmem>>, vector<1x1x8x4xbf16>
    %42 = vector.shape_cast %41 : vector<1x1x8x4xbf16> to vector<8x4xbf16>
    %cst_25 = arith.constant dense<0.000000e+00> : vector<8x288xf32>
    %43 = tpu.matmul %42, %40, %cst_25 {dimension_numbers = #tpu.dot_dimension_numbers<[1], [0], [0], [1], [0, 0, 1, 1], [], []>} : vector<8x4xbf16>, vector<4x288xbf16>, vector<8x288xf32> -> vector<8x288xf32>
    %44 = arith.addf %39, %43 : vector<8x288xf32>
    %45 = vector.extract_strided_slice %20 {offsets = [0, 20], sizes = [4, 288], strides = [1, 1]} : vector<4x384xbf16> to vector<4x288xbf16>
    %c0_26 = arith.constant 0 : index
    %c5 = arith.constant 5 : index
    %c0_27 = arith.constant 0 : index
    %c0_28 = arith.constant 0 : index
    %46 = vector.load %arg2[%c0_26, %c5, %c0_27, %c0_28] : memref<2x9x8x4xbf16, #tpu.memory_space<vmem>>, vector<1x1x8x4xbf16>
    %47 = vector.shape_cast %46 : vector<1x1x8x4xbf16> to vector<8x4xbf16>
    %cst_29 = arith.constant dense<0.000000e+00> : vector<8x288xf32>
    %48 = tpu.matmul %47, %45, %cst_29 {dimension_numbers = #tpu.dot_dimension_numbers<[1], [0], [0], [1], [0, 0, 1, 1], [], []>} : vector<8x4xbf16>, vector<4x288xbf16>, vector<8x288xf32> -> vector<8x288xf32>
    %49 = arith.addf %44, %48 : vector<8x288xf32>
    %50 = vector.extract_strided_slice %20 {offsets = [0, 36], sizes = [4, 288], strides = [1, 1]} : vector<4x384xbf16> to vector<4x288xbf16>
    %c0_30 = arith.constant 0 : index
    %c6 = arith.constant 6 : index
    %c0_31 = arith.constant 0 : index
    %c0_32 = arith.constant 0 : index
    %51 = vector.load %arg2[%c0_30, %c6, %c0_31, %c0_32] : memref<2x9x8x4xbf16, #tpu.memory_space<vmem>>, vector<1x1x8x4xbf16>
    %52 = vector.shape_cast %51 : vector<1x1x8x4xbf16> to vector<8x4xbf16>
    %cst_33 = arith.constant dense<0.000000e+00> : vector<8x288xf32>
    %53 = tpu.matmul %52, %50, %cst_33 {dimension_numbers = #tpu.dot_dimension_numbers<[1], [0], [0], [1], [0, 0, 1, 1], [], []>} : vector<8x4xbf16>, vector<4x288xbf16>, vector<8x288xf32> -> vector<8x288xf32>
    %54 = arith.addf %49, %53 : vector<8x288xf32>
    %55 = vector.extract_strided_slice %20 {offsets = [0, 37], sizes = [4, 288], strides = [1, 1]} : vector<4x384xbf16> to vector<4x288xbf16>
    %c0_34 = arith.constant 0 : index
    %c7 = arith.constant 7 : index
    %c0_35 = arith.constant 0 : index
    %c0_36 = arith.constant 0 : index
    %56 = vector.load %arg2[%c0_34, %c7, %c0_35, %c0_36] : memref<2x9x8x4xbf16, #tpu.memory_space<vmem>>, vector<1x1x8x4xbf16>
    %57 = vector.shape_cast %56 : vector<1x1x8x4xbf16> to vector<8x4xbf16>
    %cst_37 = arith.constant dense<0.000000e+00> : vector<8x288xf32>
    %58 = tpu.matmul %57, %55, %cst_37 {dimension_numbers = #tpu.dot_dimension_numbers<[1], [0], [0], [1], [0, 0, 1, 1], [], []>} : vector<8x4xbf16>, vector<4x288xbf16>, vector<8x288xf32> -> vector<8x288xf32>
    %59 = arith.addf %54, %58 : vector<8x288xf32>
    %60 = vector.extract_strided_slice %20 {offsets = [0, 38], sizes = [4, 288], strides = [1, 1]} : vector<4x384xbf16> to vector<4x288xbf16>
    %c0_38 = arith.constant 0 : index
    %c8 = arith.constant 8 : index
    %c0_39 = arith.constant 0 : index
    %c0_40 = arith.constant 0 : index
    %61 = vector.load %arg2[%c0_38, %c8, %c0_39, %c0_40] : memref<2x9x8x4xbf16, #tpu.memory_space<vmem>>, vector<1x1x8x4xbf16>
    %62 = vector.shape_cast %61 : vector<1x1x8x4xbf16> to vector<8x4xbf16>
    %cst_41 = arith.constant dense<0.000000e+00> : vector<8x288xf32>
    %63 = tpu.matmul %62, %60, %cst_41 {dimension_numbers = #tpu.dot_dimension_numbers<[1], [0], [0], [1], [0, 0, 1, 1], [], []>} : vector<8x4xbf16>, vector<4x288xbf16>, vector<8x288xf32> -> vector<8x288xf32>
    %64 = arith.addf %59, %63 : vector<8x288xf32>
    %cst_42 = arith.constant 0.000000e+00 : f32
    %65 = vector.broadcast %cst_42 : f32 to vector<8x288xf32>
    %66 = arith.subf %65, %64 : vector<8x288xf32>
    %67 = math.exp %66 : vector<8x288xf32>
    %cst_43 = arith.constant 1.000000e+00 : f32
    %68 = vector.broadcast %cst_43 : f32 to vector<8x288xf32>
    %69 = arith.addf %68, %67 : vector<8x288xf32>
    %70 = tpu.reciprocal %69 {approx = true} : vector<8x288xf32> -> vector<8x288xf32>
    %71 = arith.mulf %64, %70 : vector<8x288xf32>
    %72 = arith.truncf %71 : vector<8x288xf32> to vector<8x288xbf16>
    %c0_44 = arith.constant 0 : index
    %c1_45 = arith.constant 1 : index
    %c0_46 = arith.constant 0 : index
    %c0_47 = arith.constant 0 : index
    %73 = vector.load %arg1[%c0_44, %c1_45, %c0_46, %c0_47] : memref<2x2x4x384xbf16, #tpu.memory_space<vmem>>, vector<1x1x4x384xbf16>
    %74 = vector.shape_cast %73 : vector<1x1x4x384xbf16> to vector<4x384xbf16>
    %75 = vector.extract_strided_slice %74 {offsets = [0, 0], sizes = [4, 288], strides = [1, 1]} : vector<4x384xbf16> to vector<4x288xbf16>
    %c1_48 = arith.constant 1 : index
    %c0_49 = arith.constant 0 : index
    %c0_50 = arith.constant 0 : index
    %c0_51 = arith.constant 0 : index
    %76 = vector.load %arg2[%c1_48, %c0_49, %c0_50, %c0_51] : memref<2x9x8x4xbf16, #tpu.memory_space<vmem>>, vector<1x1x8x4xbf16>
    %77 = vector.shape_cast %76 : vector<1x1x8x4xbf16> to vector<8x4xbf16>
    %cst_52 = arith.constant dense<0.000000e+00> : vector<8x288xf32>
    %78 = tpu.matmul %77, %75, %cst_52 {dimension_numbers = #tpu.dot_dimension_numbers<[1], [0], [0], [1], [0, 0, 1, 1], [], []>} : vector<8x4xbf16>, vector<4x288xbf16>, vector<8x288xf32> -> vector<8x288xf32>
    %79 = vector.extract_strided_slice %74 {offsets = [0, 1], sizes = [4, 288], strides = [1, 1]} : vector<4x384xbf16> to vector<4x288xbf16>
    %c1_53 = arith.constant 1 : index
    %c1_54 = arith.constant 1 : index
    %c0_55 = arith.constant 0 : index
    %c0_56 = arith.constant 0 : index
    %80 = vector.load %arg2[%c1_53, %c1_54, %c0_55, %c0_56] : memref<2x9x8x4xbf16, #tpu.memory_space<vmem>>, vector<1x1x8x4xbf16>
    %81 = vector.shape_cast %80 : vector<1x1x8x4xbf16> to vector<8x4xbf16>
    %cst_57 = arith.constant dense<0.000000e+00> : vector<8x288xf32>
    %82 = tpu.matmul %81, %79, %cst_57 {dimension_numbers = #tpu.dot_dimension_numbers<[1], [0], [0], [1], [0, 0, 1, 1], [], []>} : vector<8x4xbf16>, vector<4x288xbf16>, vector<8x288xf32> -> vector<8x288xf32>
    %83 = arith.addf %78, %82 : vector<8x288xf32>
    %84 = vector.extract_strided_slice %74 {offsets = [0, 2], sizes = [4, 288], strides = [1, 1]} : vector<4x384xbf16> to vector<4x288xbf16>
    %c1_58 = arith.constant 1 : index
    %c2_59 = arith.constant 2 : index
    %c0_60 = arith.constant 0 : index
    %c0_61 = arith.constant 0 : index
    %85 = vector.load %arg2[%c1_58, %c2_59, %c0_60, %c0_61] : memref<2x9x8x4xbf16, #tpu.memory_space<vmem>>, vector<1x1x8x4xbf16>
    %86 = vector.shape_cast %85 : vector<1x1x8x4xbf16> to vector<8x4xbf16>
    %cst_62 = arith.constant dense<0.000000e+00> : vector<8x288xf32>
    %87 = tpu.matmul %86, %84, %cst_62 {dimension_numbers = #tpu.dot_dimension_numbers<[1], [0], [0], [1], [0, 0, 1, 1], [], []>} : vector<8x4xbf16>, vector<4x288xbf16>, vector<8x288xf32> -> vector<8x288xf32>
    %88 = arith.addf %83, %87 : vector<8x288xf32>
    %89 = vector.extract_strided_slice %74 {offsets = [0, 18], sizes = [4, 288], strides = [1, 1]} : vector<4x384xbf16> to vector<4x288xbf16>
    %c1_63 = arith.constant 1 : index
    %c3_64 = arith.constant 3 : index
    %c0_65 = arith.constant 0 : index
    %c0_66 = arith.constant 0 : index
    %90 = vector.load %arg2[%c1_63, %c3_64, %c0_65, %c0_66] : memref<2x9x8x4xbf16, #tpu.memory_space<vmem>>, vector<1x1x8x4xbf16>
    %91 = vector.shape_cast %90 : vector<1x1x8x4xbf16> to vector<8x4xbf16>
    %cst_67 = arith.constant dense<0.000000e+00> : vector<8x288xf32>
    %92 = tpu.matmul %91, %89, %cst_67 {dimension_numbers = #tpu.dot_dimension_numbers<[1], [0], [0], [1], [0, 0, 1, 1], [], []>} : vector<8x4xbf16>, vector<4x288xbf16>, vector<8x288xf32> -> vector<8x288xf32>
    %93 = arith.addf %88, %92 : vector<8x288xf32>
    %94 = vector.extract_strided_slice %74 {offsets = [0, 19], sizes = [4, 288], strides = [1, 1]} : vector<4x384xbf16> to vector<4x288xbf16>
    %c1_68 = arith.constant 1 : index
    %c4_69 = arith.constant 4 : index
    %c0_70 = arith.constant 0 : index
    %c0_71 = arith.constant 0 : index
    %95 = vector.load %arg2[%c1_68, %c4_69, %c0_70, %c0_71] : memref<2x9x8x4xbf16, #tpu.memory_space<vmem>>, vector<1x1x8x4xbf16>
    %96 = vector.shape_cast %95 : vector<1x1x8x4xbf16> to vector<8x4xbf16>
    %cst_72 = arith.constant dense<0.000000e+00> : vector<8x288xf32>
    %97 = tpu.matmul %96, %94, %cst_72 {dimension_numbers = #tpu.dot_dimension_numbers<[1], [0], [0], [1], [0, 0, 1, 1], [], []>} : vector<8x4xbf16>, vector<4x288xbf16>, vector<8x288xf32> -> vector<8x288xf32>
    %98 = arith.addf %93, %97 : vector<8x288xf32>
    %99 = vector.extract_strided_slice %74 {offsets = [0, 20], sizes = [4, 288], strides = [1, 1]} : vector<4x384xbf16> to vector<4x288xbf16>
    %c1_73 = arith.constant 1 : index
    %c5_74 = arith.constant 5 : index
    %c0_75 = arith.constant 0 : index
    %c0_76 = arith.constant 0 : index
    %100 = vector.load %arg2[%c1_73, %c5_74, %c0_75, %c0_76] : memref<2x9x8x4xbf16, #tpu.memory_space<vmem>>, vector<1x1x8x4xbf16>
    %101 = vector.shape_cast %100 : vector<1x1x8x4xbf16> to vector<8x4xbf16>
    %cst_77 = arith.constant dense<0.000000e+00> : vector<8x288xf32>
    %102 = tpu.matmul %101, %99, %cst_77 {dimension_numbers = #tpu.dot_dimension_numbers<[1], [0], [0], [1], [0, 0, 1, 1], [], []>} : vector<8x4xbf16>, vector<4x288xbf16>, vector<8x288xf32> -> vector<8x288xf32>
    %103 = arith.addf %98, %102 : vector<8x288xf32>
    %104 = vector.extract_strided_slice %74 {offsets = [0, 36], sizes = [4, 288], strides = [1, 1]} : vector<4x384xbf16> to vector<4x288xbf16>
    %c1_78 = arith.constant 1 : index
    %c6_79 = arith.constant 6 : index
    %c0_80 = arith.constant 0 : index
    %c0_81 = arith.constant 0 : index
    %105 = vector.load %arg2[%c1_78, %c6_79, %c0_80, %c0_81] : memref<2x9x8x4xbf16, #tpu.memory_space<vmem>>, vector<1x1x8x4xbf16>
    %106 = vector.shape_cast %105 : vector<1x1x8x4xbf16> to vector<8x4xbf16>
    %cst_82 = arith.constant dense<0.000000e+00> : vector<8x288xf32>
    %107 = tpu.matmul %106, %104, %cst_82 {dimension_numbers = #tpu.dot_dimension_numbers<[1], [0], [0], [1], [0, 0, 1, 1], [], []>} : vector<8x4xbf16>, vector<4x288xbf16>, vector<8x288xf32> -> vector<8x288xf32>
    %108 = arith.addf %103, %107 : vector<8x288xf32>
    %109 = vector.extract_strided_slice %74 {offsets = [0, 37], sizes = [4, 288], strides = [1, 1]} : vector<4x384xbf16> to vector<4x288xbf16>
    %c1_83 = arith.constant 1 : index
    %c7_84 = arith.constant 7 : index
    %c0_85 = arith.constant 0 : index
    %c0_86 = arith.constant 0 : index
    %110 = vector.load %arg2[%c1_83, %c7_84, %c0_85, %c0_86] : memref<2x9x8x4xbf16, #tpu.memory_space<vmem>>, vector<1x1x8x4xbf16>
    %111 = vector.shape_cast %110 : vector<1x1x8x4xbf16> to vector<8x4xbf16>
    %cst_87 = arith.constant dense<0.000000e+00> : vector<8x288xf32>
    %112 = tpu.matmul %111, %109, %cst_87 {dimension_numbers = #tpu.dot_dimension_numbers<[1], [0], [0], [1], [0, 0, 1, 1], [], []>} : vector<8x4xbf16>, vector<4x288xbf16>, vector<8x288xf32> -> vector<8x288xf32>
    %113 = arith.addf %108, %112 : vector<8x288xf32>
    %114 = vector.extract_strided_slice %74 {offsets = [0, 38], sizes = [4, 288], strides = [1, 1]} : vector<4x384xbf16> to vector<4x288xbf16>
    %c1_88 = arith.constant 1 : index
    %c8_89 = arith.constant 8 : index
    %c0_90 = arith.constant 0 : index
    %c0_91 = arith.constant 0 : index
    %115 = vector.load %arg2[%c1_88, %c8_89, %c0_90, %c0_91] : memref<2x9x8x4xbf16, #tpu.memory_space<vmem>>, vector<1x1x8x4xbf16>
    %116 = vector.shape_cast %115 : vector<1x1x8x4xbf16> to vector<8x4xbf16>
    %cst_92 = arith.constant dense<0.000000e+00> : vector<8x288xf32>
    %117 = tpu.matmul %116, %114, %cst_92 {dimension_numbers = #tpu.dot_dimension_numbers<[1], [0], [0], [1], [0, 0, 1, 1], [], []>} : vector<8x4xbf16>, vector<4x288xbf16>, vector<8x288xf32> -> vector<8x288xf32>
    %118 = arith.addf %113, %117 : vector<8x288xf32>
    %cst_93 = arith.constant 0.000000e+00 : f32
    %119 = vector.broadcast %cst_93 : f32 to vector<8x288xf32>
    %120 = arith.subf %119, %118 : vector<8x288xf32>
    %121 = math.exp %120 : vector<8x288xf32>
    %cst_94 = arith.constant 1.000000e+00 : f32
    %122 = vector.broadcast %cst_94 : f32 to vector<8x288xf32>
    %123 = arith.addf %122, %121 : vector<8x288xf32>
    %124 = tpu.reciprocal %123 {approx = true} : vector<8x288xf32> -> vector<8x288xf32>
    %125 = arith.mulf %118, %124 : vector<8x288xf32>
    %126 = arith.addf %71, %125 : vector<8x288xf32>
    %127 = arith.truncf %125 : vector<8x288xf32> to vector<8x288xbf16>
    %cst_95 = arith.constant 0.000000e+00 : f32
    %128 = vector.broadcast %cst_95 : f32 to vector<8x288xf32>
    %129 = arith.select %18, %126, %128 : vector<8x288xi1>, vector<8x288xf32>
    %cst_96 = arith.constant dense<0.000000e+00> : vector<8xf32>
    %130 = vector.multi_reduction <add>, %129, %cst_96 [1] : vector<8x288xf32> to vector<8xf32>
    %131 = vector.shape_cast %130 : vector<8xf32> to vector<8x1xf32>
    %cst_97 = arith.constant 3.906250e-03 : f32
    %132 = vector.broadcast %cst_97 : f32 to vector<8x1xf32>
    %133 = arith.mulf %131, %132 : vector<8x1xf32>
    %c0_98 = arith.constant 0 : index
    %c0_99 = arith.constant 0 : index
    %134 = vector.load %arg3[%c0_98, %c0_99] : memref<32x8xf32, #tpu.memory_space<vmem>>, vector<32x8xf32>
    %cst_100 = arith.constant dense<0.000000e+00> : vector<32x1xf32>
    %135 = tpu.matmul %134, %133, %cst_100 {dimension_numbers = #tpu.dot_dimension_numbers<[1], [0], [0], [1], [0, 0, 1, 1], [], []>} : vector<32x8xf32>, vector<8x1xf32>, vector<32x1xf32> -> vector<32x1xf32>
    %c0_101 = arith.constant 0 : index
    %c0_102 = arith.constant 0 : index
    %136 = vector.load %arg4[%c0_101, %c0_102] : memref<32x1xf32, #tpu.memory_space<vmem>>, vector<32x1xf32>
    %137 = arith.addf %135, %136 : vector<32x1xf32>
    %cst_103 = arith.constant 0.000000e+00 : f32
    %138 = vector.broadcast %cst_103 : f32 to vector<32x1xf32>
    %139 = arith.subf %138, %137 : vector<32x1xf32>
    %140 = math.exp %139 : vector<32x1xf32>
    %cst_104 = arith.constant 1.000000e+00 : f32
    %141 = vector.broadcast %cst_104 : f32 to vector<32x1xf32>
    %142 = arith.addf %141, %140 : vector<32x1xf32>
    %cst_105 = arith.constant 1.000000e+00 : f32
    %143 = vector.broadcast %cst_105 : f32 to vector<32x1xf32>
    %144 = arith.divf %143, %142 : vector<32x1xf32>
    %145 = arith.mulf %137, %144 : vector<32x1xf32>
    %c0_106 = arith.constant 0 : index
    %c0_107 = arith.constant 0 : index
    %146 = vector.load %arg5[%c0_106, %c0_107] : memref<16x32xf32, #tpu.memory_space<vmem>>, vector<16x32xf32>
    %cst_108 = arith.constant dense<0.000000e+00> : vector<16x1xf32>
    %147 = tpu.matmul %146, %145, %cst_108 {dimension_numbers = #tpu.dot_dimension_numbers<[1], [0], [0], [1], [0, 0, 1, 1], [], []>} : vector<16x32xf32>, vector<32x1xf32>, vector<16x1xf32> -> vector<16x1xf32>
    %c0_109 = arith.constant 0 : index
    %c0_110 = arith.constant 0 : index
    %148 = vector.load %arg6[%c0_109, %c0_110] : memref<16x1xf32, #tpu.memory_space<vmem>>, vector<16x1xf32>
    %149 = arith.addf %147, %148 : vector<16x1xf32>
    %150 = vector.extract_strided_slice %149 {offsets = [0, 0], sizes = [8, 1], strides = [1, 1]} : vector<16x1xf32> to vector<8x1xf32>
    %151 = vector.extract_strided_slice %149 {offsets = [8, 0], sizes = [8, 1], strides = [1, 1]} : vector<16x1xf32> to vector<8x1xf32>
    %152 = arith.maximumf %150, %151 : vector<8x1xf32>
    %153 = arith.subf %150, %152 : vector<8x1xf32>
    %154 = math.exp %153 : vector<8x1xf32>
    %155 = arith.subf %151, %152 : vector<8x1xf32>
    %156 = math.exp %155 : vector<8x1xf32>
    %157 = arith.addf %154, %156 : vector<8x1xf32>
    %158 = arith.divf %154, %157 : vector<8x1xf32>
    %159 = arith.truncf %158 : vector<8x1xf32> to vector<8x1xbf16>
    %160 = arith.divf %156, %157 : vector<8x1xf32>
    %161 = arith.truncf %160 : vector<8x1xf32> to vector<8x1xbf16>
    %162 = vector.broadcast %159 : vector<8x1xbf16> to vector<8x288xbf16>
    %163 = arith.mulf %72, %162 : vector<8x288xbf16>
    %164 = vector.broadcast %161 : vector<8x1xbf16> to vector<8x288xbf16>
    %165 = arith.mulf %127, %164 : vector<8x288xbf16>
    %166 = arith.addf %163, %165 : vector<8x288xbf16>
    %c0_111 = arith.constant 0 : index
    %c0_112 = arith.constant 0 : index
    %c0_113 = arith.constant 0 : index
    %167 = vector.load %arg7[%c0_111, %c0_112, %c0_113] : memref<2x8x288xbf16, #tpu.memory_space<vmem>>, vector<1x8x288xbf16>
    %168 = vector.shape_cast %167 : vector<1x8x288xbf16> to vector<8x288xbf16>
    %169 = vector.shape_cast %166 : vector<8x288xbf16> to vector<1x8x288xbf16>
    tpu.vector_store %arg7[%c0_111, %c0_112, %c0_113], %169 {strides = array<i32>} : memref<2x8x288xbf16, #tpu.memory_space<vmem>>, vector<1x8x288xbf16>,
    %c1_114 = arith.constant 1 : index
    %c0_115 = arith.constant 0 : index
    %c0_116 = arith.constant 0 : index
    %c0_117 = arith.constant 0 : index
    %170 = vector.load %arg1[%c1_114, %c0_115, %c0_116, %c0_117] : memref<2x2x4x384xbf16, #tpu.memory_space<vmem>>, vector<1x1x4x384xbf16>
    %171 = vector.shape_cast %170 : vector<1x1x4x384xbf16> to vector<4x384xbf16>
    %172 = vector.extract_strided_slice %171 {offsets = [0, 0], sizes = [4, 288], strides = [1, 1]} : vector<4x384xbf16> to vector<4x288xbf16>
    %c0_118 = arith.constant 0 : index
    %c0_119 = arith.constant 0 : index
    %c0_120 = arith.constant 0 : index
    %c0_121 = arith.constant 0 : index
    %173 = vector.load %arg2[%c0_118, %c0_119, %c0_120, %c0_121] : memref<2x9x8x4xbf16, #tpu.memory_space<vmem>>, vector<1x1x8x4xbf16>
    %174 = vector.shape_cast %173 : vector<1x1x8x4xbf16> to vector<8x4xbf16>
    %cst_122 = arith.constant dense<0.000000e+00> : vector<8x288xf32>
    %175 = tpu.matmul %174, %172, %cst_122 {dimension_numbers = #tpu.dot_dimension_numbers<[1], [0], [0], [1], [0, 0, 1, 1], [], []>} : vector<8x4xbf16>, vector<4x288xbf16>, vector<8x288xf32> -> vector<8x288xf32>
    %176 = vector.extract_strided_slice %171 {offsets = [0, 1], sizes = [4, 288], strides = [1, 1]} : vector<4x384xbf16> to vector<4x288xbf16>
    %c0_123 = arith.constant 0 : index
    %c1_124 = arith.constant 1 : index
    %c0_125 = arith.constant 0 : index
    %c0_126 = arith.constant 0 : index
    %177 = vector.load %arg2[%c0_123, %c1_124, %c0_125, %c0_126] : memref<2x9x8x4xbf16, #tpu.memory_space<vmem>>, vector<1x1x8x4xbf16>
    %178 = vector.shape_cast %177 : vector<1x1x8x4xbf16> to vector<8x4xbf16>
    %cst_127 = arith.constant dense<0.000000e+00> : vector<8x288xf32>
    %179 = tpu.matmul %178, %176, %cst_127 {dimension_numbers = #tpu.dot_dimension_numbers<[1], [0], [0], [1], [0, 0, 1, 1], [], []>} : vector<8x4xbf16>, vector<4x288xbf16>, vector<8x288xf32> -> vector<8x288xf32>
    %180 = arith.addf %175, %179 : vector<8x288xf32>
    %181 = vector.extract_strided_slice %171 {offsets = [0, 2], sizes = [4, 288], strides = [1, 1]} : vector<4x384xbf16> to vector<4x288xbf16>
    %c0_128 = arith.constant 0 : index
    %c2_129 = arith.constant 2 : index
    %c0_130 = arith.constant 0 : index
    %c0_131 = arith.constant 0 : index
    %182 = vector.load %arg2[%c0_128, %c2_129, %c0_130, %c0_131] : memref<2x9x8x4xbf16, #tpu.memory_space<vmem>>, vector<1x1x8x4xbf16>
    %183 = vector.shape_cast %182 : vector<1x1x8x4xbf16> to vector<8x4xbf16>
    %cst_132 = arith.constant dense<0.000000e+00> : vector<8x288xf32>
    %184 = tpu.matmul %183, %181, %cst_132 {dimension_numbers = #tpu.dot_dimension_numbers<[1], [0], [0], [1], [0, 0, 1, 1], [], []>} : vector<8x4xbf16>, vector<4x288xbf16>, vector<8x288xf32> -> vector<8x288xf32>
    %185 = arith.addf %180, %184 : vector<8x288xf32>
    %186 = vector.extract_strided_slice %171 {offsets = [0, 18], sizes = [4, 288], strides = [1, 1]} : vector<4x384xbf16> to vector<4x288xbf16>
    %c0_133 = arith.constant 0 : index
    %c3_134 = arith.constant 3 : index
    %c0_135 = arith.constant 0 : index
    %c0_136 = arith.constant 0 : index
    %187 = vector.load %arg2[%c0_133, %c3_134, %c0_135, %c0_136] : memref<2x9x8x4xbf16, #tpu.memory_space<vmem>>, vector<1x1x8x4xbf16>
    %188 = vector.shape_cast %187 : vector<1x1x8x4xbf16> to vector<8x4xbf16>
    %cst_137 = arith.constant dense<0.000000e+00> : vector<8x288xf32>
    %189 = tpu.matmul %188, %186, %cst_137 {dimension_numbers = #tpu.dot_dimension_numbers<[1], [0], [0], [1], [0, 0, 1, 1], [], []>} : vector<8x4xbf16>, vector<4x288xbf16>, vector<8x288xf32> -> vector<8x288xf32>
    %190 = arith.addf %185, %189 : vector<8x288xf32>
    %191 = vector.extract_strided_slice %171 {offsets = [0, 19], sizes = [4, 288], strides = [1, 1]} : vector<4x384xbf16> to vector<4x288xbf16>
    %c0_138 = arith.constant 0 : index
    %c4_139 = arith.constant 4 : index
    %c0_140 = arith.constant 0 : index
    %c0_141 = arith.constant 0 : index
    %192 = vector.load %arg2[%c0_138, %c4_139, %c0_140, %c0_141] : memref<2x9x8x4xbf16, #tpu.memory_space<vmem>>, vector<1x1x8x4xbf16>
    %193 = vector.shape_cast %192 : vector<1x1x8x4xbf16> to vector<8x4xbf16>
    %cst_142 = arith.constant dense<0.000000e+00> : vector<8x288xf32>
    %194 = tpu.matmul %193, %191, %cst_142 {dimension_numbers = #tpu.dot_dimension_numbers<[1], [0], [0], [1], [0, 0, 1, 1], [], []>} : vector<8x4xbf16>, vector<4x288xbf16>, vector<8x288xf32> -> vector<8x288xf32>
    %195 = arith.addf %190, %194 : vector<8x288xf32>
    %196 = vector.extract_strided_slice %171 {offsets = [0, 20], sizes = [4, 288], strides = [1, 1]} : vector<4x384xbf16> to vector<4x288xbf16>
    %c0_143 = arith.constant 0 : index
    %c5_144 = arith.constant 5 : index
    %c0_145 = arith.constant 0 : index
    %c0_146 = arith.constant 0 : index
    %197 = vector.load %arg2[%c0_143, %c5_144, %c0_145, %c0_146] : memref<2x9x8x4xbf16, #tpu.memory_space<vmem>>, vector<1x1x8x4xbf16>
    %198 = vector.shape_cast %197 : vector<1x1x8x4xbf16> to vector<8x4xbf16>
    %cst_147 = arith.constant dense<0.000000e+00> : vector<8x288xf32>
    %199 = tpu.matmul %198, %196, %cst_147 {dimension_numbers = #tpu.dot_dimension_numbers<[1], [0], [0], [1], [0, 0, 1, 1], [], []>} : vector<8x4xbf16>, vector<4x288xbf16>, vector<8x288xf32> -> vector<8x288xf32>
    %200 = arith.addf %195, %199 : vector<8x288xf32>
    %201 = vector.extract_strided_slice %171 {offsets = [0, 36], sizes = [4, 288], strides = [1, 1]} : vector<4x384xbf16> to vector<4x288xbf16>
    %c0_148 = arith.constant 0 : index
    %c6_149 = arith.constant 6 : index
    %c0_150 = arith.constant 0 : index
    %c0_151 = arith.constant 0 : index
    %202 = vector.load %arg2[%c0_148, %c6_149, %c0_150, %c0_151] : memref<2x9x8x4xbf16, #tpu.memory_space<vmem>>, vector<1x1x8x4xbf16>
    %203 = vector.shape_cast %202 : vector<1x1x8x4xbf16> to vector<8x4xbf16>
    %cst_152 = arith.constant dense<0.000000e+00> : vector<8x288xf32>
    %204 = tpu.matmul %203, %201, %cst_152 {dimension_numbers = #tpu.dot_dimension_numbers<[1], [0], [0], [1], [0, 0, 1, 1], [], []>} : vector<8x4xbf16>, vector<4x288xbf16>, vector<8x288xf32> -> vector<8x288xf32>
    %205 = arith.addf %200, %204 : vector<8x288xf32>
    %206 = vector.extract_strided_slice %171 {offsets = [0, 37], sizes = [4, 288], strides = [1, 1]} : vector<4x384xbf16> to vector<4x288xbf16>
    %c0_153 = arith.constant 0 : index
    %c7_154 = arith.constant 7 : index
    %c0_155 = arith.constant 0 : index
    %c0_156 = arith.constant 0 : index
    %207 = vector.load %arg2[%c0_153, %c7_154, %c0_155, %c0_156] : memref<2x9x8x4xbf16, #tpu.memory_space<vmem>>, vector<1x1x8x4xbf16>
    %208 = vector.shape_cast %207 : vector<1x1x8x4xbf16> to vector<8x4xbf16>
    %cst_157 = arith.constant dense<0.000000e+00> : vector<8x288xf32>
    %209 = tpu.matmul %208, %206, %cst_157 {dimension_numbers = #tpu.dot_dimension_numbers<[1], [0], [0], [1], [0, 0, 1, 1], [], []>} : vector<8x4xbf16>, vector<4x288xbf16>, vector<8x288xf32> -> vector<8x288xf32>
    %210 = arith.addf %205, %209 : vector<8x288xf32>
    %211 = vector.extract_strided_slice %171 {offsets = [0, 38], sizes = [4, 288], strides = [1, 1]} : vector<4x384xbf16> to vector<4x288xbf16>
    %c0_158 = arith.constant 0 : index
    %c8_159 = arith.constant 8 : index
    %c0_160 = arith.constant 0 : index
    %c0_161 = arith.constant 0 : index
    %212 = vector.load %arg2[%c0_158, %c8_159, %c0_160, %c0_161] : memref<2x9x8x4xbf16, #tpu.memory_space<vmem>>, vector<1x1x8x4xbf16>
    %213 = vector.shape_cast %212 : vector<1x1x8x4xbf16> to vector<8x4xbf16>
    %cst_162 = arith.constant dense<0.000000e+00> : vector<8x288xf32>
    %214 = tpu.matmul %213, %211, %cst_162 {dimension_numbers = #tpu.dot_dimension_numbers<[1], [0], [0], [1], [0, 0, 1, 1], [], []>} : vector<8x4xbf16>, vector<4x288xbf16>, vector<8x288xf32> -> vector<8x288xf32>
    %215 = arith.addf %210, %214 : vector<8x288xf32>
    %cst_163 = arith.constant 0.000000e+00 : f32
    %216 = vector.broadcast %cst_163 : f32 to vector<8x288xf32>
    %217 = arith.subf %216, %215 : vector<8x288xf32>
    %218 = math.exp %217 : vector<8x288xf32>
    %cst_164 = arith.constant 1.000000e+00 : f32
    %219 = vector.broadcast %cst_164 : f32 to vector<8x288xf32>
    %220 = arith.addf %219, %218 : vector<8x288xf32>
    %221 = tpu.reciprocal %220 {approx = true} : vector<8x288xf32> -> vector<8x288xf32>
    %222 = arith.mulf %215, %221 : vector<8x288xf32>
    %223 = arith.truncf %222 : vector<8x288xf32> to vector<8x288xbf16>
    %c1_165 = arith.constant 1 : index
    %c1_166 = arith.constant 1 : index
    %c0_167 = arith.constant 0 : index
    %c0_168 = arith.constant 0 : index
    %224 = vector.load %arg1[%c1_165, %c1_166, %c0_167, %c0_168] : memref<2x2x4x384xbf16, #tpu.memory_space<vmem>>, vector<1x1x4x384xbf16>
    %225 = vector.shape_cast %224 : vector<1x1x4x384xbf16> to vector<4x384xbf16>
    %226 = vector.extract_strided_slice %225 {offsets = [0, 0], sizes = [4, 288], strides = [1, 1]} : vector<4x384xbf16> to vector<4x288xbf16>
    %c1_169 = arith.constant 1 : index
    %c0_170 = arith.constant 0 : index
    %c0_171 = arith.constant 0 : index
    %c0_172 = arith.constant 0 : index
    %227 = vector.load %arg2[%c1_169, %c0_170, %c0_171, %c0_172] : memref<2x9x8x4xbf16, #tpu.memory_space<vmem>>, vector<1x1x8x4xbf16>
    %228 = vector.shape_cast %227 : vector<1x1x8x4xbf16> to vector<8x4xbf16>
    %cst_173 = arith.constant dense<0.000000e+00> : vector<8x288xf32>
    %229 = tpu.matmul %228, %226, %cst_173 {dimension_numbers = #tpu.dot_dimension_numbers<[1], [0], [0], [1], [0, 0, 1, 1], [], []>} : vector<8x4xbf16>, vector<4x288xbf16>, vector<8x288xf32> -> vector<8x288xf32>
    %230 = vector.extract_strided_slice %225 {offsets = [0, 1], sizes = [4, 288], strides = [1, 1]} : vector<4x384xbf16> to vector<4x288xbf16>
    %c1_174 = arith.constant 1 : index
    %c1_175 = arith.constant 1 : index
    %c0_176 = arith.constant 0 : index
    %c0_177 = arith.constant 0 : index
    %231 = vector.load %arg2[%c1_174, %c1_175, %c0_176, %c0_177] : memref<2x9x8x4xbf16, #tpu.memory_space<vmem>>, vector<1x1x8x4xbf16>
    %232 = vector.shape_cast %231 : vector<1x1x8x4xbf16> to vector<8x4xbf16>
    %cst_178 = arith.constant dense<0.000000e+00> : vector<8x288xf32>
    %233 = tpu.matmul %232, %230, %cst_178 {dimension_numbers = #tpu.dot_dimension_numbers<[1], [0], [0], [1], [0, 0, 1, 1], [], []>} : vector<8x4xbf16>, vector<4x288xbf16>, vector<8x288xf32> -> vector<8x288xf32>
    %234 = arith.addf %229, %233 : vector<8x288xf32>
    %235 = vector.extract_strided_slice %225 {offsets = [0, 2], sizes = [4, 288], strides = [1, 1]} : vector<4x384xbf16> to vector<4x288xbf16>
    %c1_179 = arith.constant 1 : index
    %c2_180 = arith.constant 2 : index
    %c0_181 = arith.constant 0 : index
    %c0_182 = arith.constant 0 : index
    %236 = vector.load %arg2[%c1_179, %c2_180, %c0_181, %c0_182] : memref<2x9x8x4xbf16, #tpu.memory_space<vmem>>, vector<1x1x8x4xbf16>
    %237 = vector.shape_cast %236 : vector<1x1x8x4xbf16> to vector<8x4xbf16>
    %cst_183 = arith.constant dense<0.000000e+00> : vector<8x288xf32>
    %238 = tpu.matmul %237, %235, %cst_183 {dimension_numbers = #tpu.dot_dimension_numbers<[1], [0], [0], [1], [0, 0, 1, 1], [], []>} : vector<8x4xbf16>, vector<4x288xbf16>, vector<8x288xf32> -> vector<8x288xf32>
    %239 = arith.addf %234, %238 : vector<8x288xf32>
    %240 = vector.extract_strided_slice %225 {offsets = [0, 18], sizes = [4, 288], strides = [1, 1]} : vector<4x384xbf16> to vector<4x288xbf16>
    %c1_184 = arith.constant 1 : index
    %c3_185 = arith.constant 3 : index
    %c0_186 = arith.constant 0 : index
    %c0_187 = arith.constant 0 : index
    %241 = vector.load %arg2[%c1_184, %c3_185, %c0_186, %c0_187] : memref<2x9x8x4xbf16, #tpu.memory_space<vmem>>, vector<1x1x8x4xbf16>
    %242 = vector.shape_cast %241 : vector<1x1x8x4xbf16> to vector<8x4xbf16>
    %cst_188 = arith.constant dense<0.000000e+00> : vector<8x288xf32>
    %243 = tpu.matmul %242, %240, %cst_188 {dimension_numbers = #tpu.dot_dimension_numbers<[1], [0], [0], [1], [0, 0, 1, 1], [], []>} : vector<8x4xbf16>, vector<4x288xbf16>, vector<8x288xf32> -> vector<8x288xf32>
    %244 = arith.addf %239, %243 : vector<8x288xf32>
    %245 = vector.extract_strided_slice %225 {offsets = [0, 19], sizes = [4, 288], strides = [1, 1]} : vector<4x384xbf16> to vector<4x288xbf16>
    %c1_189 = arith.constant 1 : index
    %c4_190 = arith.constant 4 : index
    %c0_191 = arith.constant 0 : index
    %c0_192 = arith.constant 0 : index
    %246 = vector.load %arg2[%c1_189, %c4_190, %c0_191, %c0_192] : memref<2x9x8x4xbf16, #tpu.memory_space<vmem>>, vector<1x1x8x4xbf16>
    %247 = vector.shape_cast %246 : vector<1x1x8x4xbf16> to vector<8x4xbf16>
    %cst_193 = arith.constant dense<0.000000e+00> : vector<8x288xf32>
    %248 = tpu.matmul %247, %245, %cst_193 {dimension_numbers = #tpu.dot_dimension_numbers<[1], [0], [0], [1], [0, 0, 1, 1], [], []>} : vector<8x4xbf16>, vector<4x288xbf16>, vector<8x288xf32> -> vector<8x288xf32>
    %249 = arith.addf %244, %248 : vector<8x288xf32>
    %250 = vector.extract_strided_slice %225 {offsets = [0, 20], sizes = [4, 288], strides = [1, 1]} : vector<4x384xbf16> to vector<4x288xbf16>
    %c1_194 = arith.constant 1 : index
    %c5_195 = arith.constant 5 : index
    %c0_196 = arith.constant 0 : index
    %c0_197 = arith.constant 0 : index
    %251 = vector.load %arg2[%c1_194, %c5_195, %c0_196, %c0_197] : memref<2x9x8x4xbf16, #tpu.memory_space<vmem>>, vector<1x1x8x4xbf16>
    %252 = vector.shape_cast %251 : vector<1x1x8x4xbf16> to vector<8x4xbf16>
    %cst_198 = arith.constant dense<0.000000e+00> : vector<8x288xf32>
    %253 = tpu.matmul %252, %250, %cst_198 {dimension_numbers = #tpu.dot_dimension_numbers<[1], [0], [0], [1], [0, 0, 1, 1], [], []>} : vector<8x4xbf16>, vector<4x288xbf16>, vector<8x288xf32> -> vector<8x288xf32>
    %254 = arith.addf %249, %253 : vector<8x288xf32>
    %255 = vector.extract_strided_slice %225 {offsets = [0, 36], sizes = [4, 288], strides = [1, 1]} : vector<4x384xbf16> to vector<4x288xbf16>
    %c1_199 = arith.constant 1 : index
    %c6_200 = arith.constant 6 : index
    %c0_201 = arith.constant 0 : index
    %c0_202 = arith.constant 0 : index
    %256 = vector.load %arg2[%c1_199, %c6_200, %c0_201, %c0_202] : memref<2x9x8x4xbf16, #tpu.memory_space<vmem>>, vector<1x1x8x4xbf16>
    %257 = vector.shape_cast %256 : vector<1x1x8x4xbf16> to vector<8x4xbf16>
    %cst_203 = arith.constant dense<0.000000e+00> : vector<8x288xf32>
    %258 = tpu.matmul %257, %255, %cst_203 {dimension_numbers = #tpu.dot_dimension_numbers<[1], [0], [0], [1], [0, 0, 1, 1], [], []>} : vector<8x4xbf16>, vector<4x288xbf16>, vector<8x288xf32> -> vector<8x288xf32>
    %259 = arith.addf %254, %258 : vector<8x288xf32>
    %260 = vector.extract_strided_slice %225 {offsets = [0, 37], sizes = [4, 288], strides = [1, 1]} : vector<4x384xbf16> to vector<4x288xbf16>
    %c1_204 = arith.constant 1 : index
    %c7_205 = arith.constant 7 : index
    %c0_206 = arith.constant 0 : index
    %c0_207 = arith.constant 0 : index
    %261 = vector.load %arg2[%c1_204, %c7_205, %c0_206, %c0_207] : memref<2x9x8x4xbf16, #tpu.memory_space<vmem>>, vector<1x1x8x4xbf16>
    %262 = vector.shape_cast %261 : vector<1x1x8x4xbf16> to vector<8x4xbf16>
    %cst_208 = arith.constant dense<0.000000e+00> : vector<8x288xf32>
    %263 = tpu.matmul %262, %260, %cst_208 {dimension_numbers = #tpu.dot_dimension_numbers<[1], [0], [0], [1], [0, 0, 1, 1], [], []>} : vector<8x4xbf16>, vector<4x288xbf16>, vector<8x288xf32> -> vector<8x288xf32>
    %264 = arith.addf %259, %263 : vector<8x288xf32>
    %265 = vector.extract_strided_slice %225 {offsets = [0, 38], sizes = [4, 288], strides = [1, 1]} : vector<4x384xbf16> to vector<4x288xbf16>
    %c1_209 = arith.constant 1 : index
    %c8_210 = arith.constant 8 : index
    %c0_211 = arith.constant 0 : index
    %c0_212 = arith.constant 0 : index
    %266 = vector.load %arg2[%c1_209, %c8_210, %c0_211, %c0_212] : memref<2x9x8x4xbf16, #tpu.memory_space<vmem>>, vector<1x1x8x4xbf16>
    %267 = vector.shape_cast %266 : vector<1x1x8x4xbf16> to vector<8x4xbf16>
    %cst_213 = arith.constant dense<0.000000e+00> : vector<8x288xf32>
    %268 = tpu.matmul %267, %265, %cst_213 {dimension_numbers = #tpu.dot_dimension_numbers<[1], [0], [0], [1], [0, 0, 1, 1], [], []>} : vector<8x4xbf16>, vector<4x288xbf16>, vector<8x288xf32> -> vector<8x288xf32>
    %269 = arith.addf %264, %268 : vector<8x288xf32>
    %cst_214 = arith.constant 0.000000e+00 : f32
    %270 = vector.broadcast %cst_214 : f32 to vector<8x288xf32>
    %271 = arith.subf %270, %269 : vector<8x288xf32>
    %272 = math.exp %271 : vector<8x288xf32>
    %cst_215 = arith.constant 1.000000e+00 : f32
    %273 = vector.broadcast %cst_215 : f32 to vector<8x288xf32>
    %274 = arith.addf %273, %272 : vector<8x288xf32>
    %275 = tpu.reciprocal %274 {approx = true} : vector<8x288xf32> -> vector<8x288xf32>
    %276 = arith.mulf %269, %275 : vector<8x288xf32>
    %277 = arith.addf %222, %276 : vector<8x288xf32>
    %278 = arith.truncf %276 : vector<8x288xf32> to vector<8x288xbf16>
    %cst_216 = arith.constant 0.000000e+00 : f32
    %279 = vector.broadcast %cst_216 : f32 to vector<8x288xf32>
    %280 = arith.select %18, %277, %279 : vector<8x288xi1>, vector<8x288xf32>
    %cst_217 = arith.constant dense<0.000000e+00> : vector<8xf32>
    %281 = vector.multi_reduction <add>, %280, %cst_217 [1] : vector<8x288xf32> to vector<8xf32>
    %282 = vector.shape_cast %281 : vector<8xf32> to vector<8x1xf32>
    %cst_218 = arith.constant 3.906250e-03 : f32
    %283 = vector.broadcast %cst_218 : f32 to vector<8x1xf32>
    %284 = arith.mulf %282, %283 : vector<8x1xf32>
    %c0_219 = arith.constant 0 : index
    %c0_220 = arith.constant 0 : index
    %285 = vector.load %arg3[%c0_219, %c0_220] : memref<32x8xf32, #tpu.memory_space<vmem>>, vector<32x8xf32>
    %cst_221 = arith.constant dense<0.000000e+00> : vector<32x1xf32>
    %286 = tpu.matmul %285, %284, %cst_221 {dimension_numbers = #tpu.dot_dimension_numbers<[1], [0], [0], [1], [0, 0, 1, 1], [], []>} : vector<32x8xf32>, vector<8x1xf32>, vector<32x1xf32> -> vector<32x1xf32>
    %c0_222 = arith.constant 0 : index
    %c0_223 = arith.constant 0 : index
    %287 = vector.load %arg4[%c0_222, %c0_223] : memref<32x1xf32, #tpu.memory_space<vmem>>, vector<32x1xf32>
    %288 = arith.addf %286, %287 : vector<32x1xf32>
    %cst_224 = arith.constant 0.000000e+00 : f32
    %289 = vector.broadcast %cst_224 : f32 to vector<32x1xf32>
    %290 = arith.subf %289, %288 : vector<32x1xf32>
    %291 = math.exp %290 : vector<32x1xf32>
    %cst_225 = arith.constant 1.000000e+00 : f32
    %292 = vector.broadcast %cst_225 : f32 to vector<32x1xf32>
    %293 = arith.addf %292, %291 : vector<32x1xf32>
    %cst_226 = arith.constant 1.000000e+00 : f32
    %294 = vector.broadcast %cst_226 : f32 to vector<32x1xf32>
    %295 = arith.divf %294, %293 : vector<32x1xf32>
    %296 = arith.mulf %288, %295 : vector<32x1xf32>
    %c0_227 = arith.constant 0 : index
    %c0_228 = arith.constant 0 : index
    %297 = vector.load %arg5[%c0_227, %c0_228] : memref<16x32xf32, #tpu.memory_space<vmem>>, vector<16x32xf32>
    %cst_229 = arith.constant dense<0.000000e+00> : vector<16x1xf32>
    %298 = tpu.matmul %297, %296, %cst_229 {dimension_numbers = #tpu.dot_dimension_numbers<[1], [0], [0], [1], [0, 0, 1, 1], [], []>} : vector<16x32xf32>, vector<32x1xf32>, vector<16x1xf32> -> vector<16x1xf32>
    %c0_230 = arith.constant 0 : index
    %c0_231 = arith.constant 0 : index
    %299 = vector.load %arg6[%c0_230, %c0_231] : memref<16x1xf32, #tpu.memory_space<vmem>>, vector<16x1xf32>
    %300 = arith.addf %298, %299 : vector<16x1xf32>
    %301 = vector.extract_strided_slice %300 {offsets = [0, 0], sizes = [8, 1], strides = [1, 1]} : vector<16x1xf32> to vector<8x1xf32>
    %302 = vector.extract_strided_slice %300 {offsets = [8, 0], sizes = [8, 1], strides = [1, 1]} : vector<16x1xf32> to vector<8x1xf32>
    %303 = arith.maximumf %301, %302 : vector<8x1xf32>
    %304 = arith.subf %301, %303 : vector<8x1xf32>
    %305 = math.exp %304 : vector<8x1xf32>
    %306 = arith.subf %302, %303 : vector<8x1xf32>
    %307 = math.exp %306 : vector<8x1xf32>
    %308 = arith.addf %305, %307 : vector<8x1xf32>
    %309 = arith.divf %305, %308 : vector<8x1xf32>
    %310 = arith.truncf %309 : vector<8x1xf32> to vector<8x1xbf16>
    %311 = arith.divf %307, %308 : vector<8x1xf32>
    %312 = arith.truncf %311 : vector<8x1xf32> to vector<8x1xbf16>
    %313 = vector.broadcast %310 : vector<8x1xbf16> to vector<8x288xbf16>
    %314 = arith.mulf %223, %313 : vector<8x288xbf16>
    %315 = vector.broadcast %312 : vector<8x1xbf16> to vector<8x288xbf16>
    %316 = arith.mulf %278, %315 : vector<8x288xbf16>
    %317 = arith.addf %314, %316 : vector<8x288xbf16>
    %c1_232 = arith.constant 1 : index
    %c0_233 = arith.constant 0 : index
    %c0_234 = arith.constant 0 : index
    %318 = vector.load %arg7[%c1_232, %c0_233, %c0_234] : memref<2x8x288xbf16, #tpu.memory_space<vmem>>, vector<1x8x288xbf16>
    %319 = vector.shape_cast %318 : vector<1x8x288xbf16> to vector<8x288xbf16>
    %320 = vector.shape_cast %317 : vector<8x288xbf16> to vector<1x8x288xbf16>
    tpu.vector_store %arg7[%c1_232, %c0_233, %c0_234], %320 {strides = array<i32>} : memref<2x8x288xbf16, #tpu.memory_space<vmem>>, vector<1x8x288xbf16>,
    return
  }
  func.func @transform_0(%arg0: i32) -> (i32, i32, i32, i32) {
    %c0_i32 = arith.constant 0 : i32
    %c0_i32_0 = arith.constant 0 : i32
    %c0_i32_1 = arith.constant 0 : i32
    %c0_i32_2 = arith.constant 0 : i32
    return %arg0, %c0_i32, %c0_i32_0, %c0_i32_1 : i32, i32, i32, i32
  }
  func.func @transform_1(%arg0: i32) -> (i32, i32, i32, i32) {
    %c0_i32 = arith.constant 0 : i32
    %c0_i32_0 = arith.constant 0 : i32
    %c0_i32_1 = arith.constant 0 : i32
    %c0_i32_2 = arith.constant 0 : i32
    %c0_i32_3 = arith.constant 0 : i32
    return %c0_i32, %c0_i32_0, %c0_i32_1, %c0_i32_2 : i32, i32, i32, i32
  }
  func.func @transform_2(%arg0: i32) -> (i32, i32) {
    %c0_i32 = arith.constant 0 : i32
    %c0_i32_0 = arith.constant 0 : i32
    %c0_i32_1 = arith.constant 0 : i32
    return %c0_i32, %c0_i32_0 : i32, i32
  }
  func.func @transform_3(%arg0: i32) -> (i32, i32) {
    %c0_i32 = arith.constant 0 : i32
    %c0_i32_0 = arith.constant 0 : i32
    %c0_i32_1 = arith.constant 0 : i32
    return %c0_i32, %c0_i32_0 : i32, i32
  }
  func.func @transform_4(%arg0: i32) -> (i32, i32) {
    %c0_i32 = arith.constant 0 : i32
    %c0_i32_0 = arith.constant 0 : i32
    %c0_i32_1 = arith.constant 0 : i32
    return %c0_i32, %c0_i32_0 : i32, i32
  }
  func.func @transform_5(%arg0: i32) -> (i32, i32) {
    %c0_i32 = arith.constant 0 : i32
    %c0_i32_0 = arith.constant 0 : i32
    %c0_i32_1 = arith.constant 0 : i32
    return %c0_i32, %c0_i32_0 : i32, i32
  }
  func.func @transform_6(%arg0: i32) -> (i32, i32, i32) {
    %c0_i32 = arith.constant 0 : i32
    %c0_i32_0 = arith.constant 0 : i32
    %c0_i32_1 = arith.constant 0 : i32
    return %arg0, %c0_i32, %c0_i32_0 : i32, i32, i32
  }
}

</mosaic_0001>

<bundles_post_ra>
// kernel: tpu_custom_call.1
= control target key start
LH: loop header
LB: loop body
LE: loop exit
PB: predicated region body
PF: predicated region fallthrough
CT: control target
= control target key end

     0   :  { %11 = vsyncpa [#allocation3], 0  ;;  %s7259_s0 = inlined_call_operand.vmem [shape: bf16[4,2,4,384], index: 0, kind: input, shape index: {}]   ;;  %s7260_s1 = inlined_call_operand.vmem [shape: bf16[2,9,8,4], index: 1, kind: input, shape index: {}]   ;;  %s7261_s2 = inlined_call_operand.vmem [shape: f32[32,8], index: 2, kind: input, shape index: {}]   ;;  %s7262_s3 = inlined_call_operand.vmem [shape: f32[32,1], index: 3, kind: input, shape index: {}]   ;;  %s7263_s4 = inlined_call_operand.vmem [shape: f32[16,32], index: 4, kind: input, shape index: {}]   ;;  %s7264_s5 = inlined_call_operand.vmem [shape: f32[16,1], index: 5, kind: input, shape index: {}]   ;;  %s7265_s6 = inlined_call_operand.hbm [shape: bf16[4,8,288], index: 6, kind: output, shape index: {}]  }
   0x1   :  { %13 = vsyncpa [#allocation3 + $0x1], 0  ;;  %s5918_s21 = smov 0   ;;  %s5920_s22 = smov 0  }
   0x2   :  { %s5922_s23 = smov 0   ;;  %s5924_s24 = smov 0  }
   0x3 LB: > { %s5939_s25 = sadd.s32 4294967295, %s5866_s24   ;;  %s4851_s26 = sadd.s32 4294967294, %s5866_s24   ;;  %s5866_s24 = sphi %s5924_s24, %s7422_s24   ;;  %s5862_s23 = sphi %s5922_s23, %s7421_s23   ;;  %s5858_s22 = sphi %s5920_s22, %s7420_s22   ;;  %s5854_s21 = sphi %s5918_s21, %s7419_s21  }
   0x4   : > { %s5943_s27 = sadd.s32 1, %s5866_s24   ;;  %s157_s28 = sadd.s32 1, %s5862_s23 }
   0x5   : > { %s154_s29 = ssub.s32 %s5866_s24, %s5943_s27  ;;  %p167_p0 = scmp.ne.s32.totalorder %s5862_s23, %s5858_s22 }
   0x6   : > { %p155_p1 = scmp.eq.s32.totalorder %s154_s29, 0  ;;  %p168_p2 = scmp.eq.s32.totalorder %s5939_s25, 1 }
   0x7   : > { %p173_p3 = scmp.ne.s32.totalorder %s5858_s22, %s5854_s21  ;;  %p174_p4 = scmp.eq.s32.totalorder %s4851_s26, 1 }
   0x8   : > { %s5954_s30 = scalar_select %p155_p1, %s5862_s23, %s157_s28  }
   0x9   : > { %p5956_p5 = por %p168_p2, %p167_p0  ;;  %p5960_p6 = por %p174_p4, %p173_p3 }
   0xa   : > { %p4854_p7 = scmp.ge.s32.totalorder %s5866_s24, 1  ;;  %p217_p8 = scmp.lt.s32.totalorder %s5866_s24, 3 }
   0xc   : > { %p218_p9 = pnand %p4854_p7, %p217_p8 }
   0xe   : > { %221 = sbr.rel (%p218_p9) target bundleno = 2264 (0x8d8), region = 44 }
  0x15   : > { %s4855_s9 = sshll.u32 %s5939_s25, 1  ;;  %v257_v0 = vlaneseq  ;;  %v5868_v1 = vmov 1983009808   ;;  %v7273_v3 = vmov 0.0   ;;  %vm5870_vm0 = vmmov 0   ;;  %s5872_s14 = smov 127  }
  0x16   : > { %p249_p10 = scmp.lt.s32.totalorder %s4855_s9, 3  ;;  %v319_v2 = vunpack.c.l.s4 %v5868_v1  ;;  %5119 = vmatprep.subr.bf16.mxu1 %v7273_v3  ;;  %5121 = vmatprep.mubr.msk.bf16.mxu1 %vm5870_vm0, %v7273_v3  ;;  %v7270_v7 = vmov 0   ;;  %s5873_s15 = smov 126   ;;  %vm346_vm1 = vcmask 1041408   ;;  %vm339_vm2 = vcmask 1039360  }
  0x17   : > { %v322_v4 = vshrl.u32 %v257_v0, 7  ;;  %388 = vmatprep.mubr.bf16.mxu0 %v7270_v7  ;;  %5707 = vset.pattern.permute.xlu0 %v7270_v7  ;;  %s5874_s16 = smov 110   ;;  %s5875_s17 = smov 109   ;;  %v4857_v22 = vld [vmem:[%s7260_s1 + $0x4] sm:$0xf]  ;;  %vm7269_vm3 = vcmask 31744  }
  0x18   : > { %s7424_s9 = smov (!%p249_p10, %s4855_s9), 3  ;;  %v320_v5 = vunpack.c.0.s8 %v319_v2  ;;  %s5876_s18 = smov 108   ;;  %vm538_vm4 = vcmask 1031168   ;;  %v313_v33 = vld [vmem:[%s7260_s1] sm:$0xf]  ;;  %vm7266_vm5 = vcmask 900096  }
  0x19   : > { %s5646_s10 = smul.u32 12, %s7424_s9  ;;  %s5877_s19 = smov 92   ;;  %v4864_v41 = vld [vmem:[%s7260_s1 + $0x8] sm:$0xf]  ;;  %vm752_vm6 = vcmask 891904   ;;  %vm859_vm7 = vcmask 883712  }
  0x1a   : > { %v5971_v6 = vsub.s32 %v320_v5, %v322_v4  ;;  %s5878_s20 = smov 91   ;;  %s5879_s26 = smov 90   ;;  %v4868_v49 = vld [vmem:[%s7260_s1 + $0xc] sm:$0xf]  ;;  %v4872_v57 = vld [vmem:[%s7260_s1 + $0x10] sm:$0xf] }
  0x1b   : > { %s5978_s13 = scalar_lea.vmem %s7259_s0, %s5646_s10  ;;  %vm966_vm8 = vcmask 752640   ;;  %v4876_v2 = vld [vmem:[%s7260_s1 + $0x14] sm:$0xf]  ;;  %vm7268_vm9 = vcmask 744448   ;;  %vm7267_vm10 = vcmask 736256   ;;  %s245_s28 = sand.u32 1, %s5858_s22  }
  0x1c   : > { %v312_v8 = vld [vmem:[%s5978_s13] sm:$0x3f]  ;;  %v4892_v13 = vld [vmem:[%s5978_s13 + $0x6] sm:$0x3f]  ;;  %s5645_s29 = smul.u32 24, %s245_s28 }
  0x1d   : > { %v5982_v9 = vrot.slane %v312_v8, %v5971_v6  ;;  %v317_v10 = vcombine.high %v312_v8, %v312_v8  ;;  %v6039_v14 = vrot.slane %v4892_v13, %v5971_v6  ;;  %v1307_v15 = vcombine.high %v4892_v13, %v4892_v13  ;;  %v4880_v13 = vld [vmem:[%s7260_s1 + $0x18] sm:$0xf] }
  0x1f   : > { %333 = vrot.lane.b32.xlu0 %v5982_v9, %s5872_s14  ;;  %v5987_v11 = vrot.slane %v317_v10, %v5971_v6  ;;  %v5991_v12 = vcombine.high %v5982_v9, %v5982_v9  ;;  %v6045_v16 = vcombine.high %v6039_v14, %v6039_v14  ;;  %v6050_v17 = vrot.slane %v1307_v15, %v5971_v6 }
  0x20   : > { %v441_v28 = vsel %vm346_vm1, %v5982_v9, 0 }
  0x21   : > { %337 = vrot.lane.b32.xlu1 %v5987_v11, %s5872_s14  ;;  %v447_v25 = vsel %vm346_vm1, %v5987_v11, 0 }
  0x23   : > { %335 = vrot.lane.b32.xlu0 %v5991_v12, %s5872_s14 }
  0x25   : > { %532 = vrot.lane.b32.xlu1 %v5982_v9, %s5873_s15 }
  0x27   : > { %534 = vrot.lane.b32.xlu0 %v5991_v12, %s5873_s15 }
  0x29   : > { %536 = vrot.lane.b32.xlu1 %v5987_v11, %s5873_s15 }
  0x2b   : > { %639 = vrot.lane.b32.xlu0 %v5982_v9, %s5874_s16 }
  0x2d   : > { %641 = vrot.lane.b32.xlu1 %v5991_v12, %s5874_s16 }
  0x2f   : > { %643 = vrot.lane.b32.xlu0 %v5987_v11, %s5874_s16 }
  0x31   : > { %746 = vrot.lane.b32.xlu1 %v5982_v9, %s5875_s17 }
  0x33   : > { %748 = vrot.lane.b32.xlu0 %v5991_v12, %s5875_s17 }
  0x35   : > { %750 = vrot.lane.b32.xlu1 %v5987_v11, %s5875_s17 }
  0x37   : > { %853 = vrot.lane.b32.xlu0 %v5982_v9, %s5876_s18 }
  0x39   : > { %855 = vrot.lane.b32.xlu1 %v5991_v12, %s5876_s18 }
  0x3b   : > { %857 = vrot.lane.b32.xlu0 %v5987_v11, %s5876_s18 }
  0x3d   : > { %960 = vrot.lane.b32.xlu1 %v5982_v9, %s5877_s19 }
  0x3f   : > { %962 = vrot.lane.b32.xlu0 %v5991_v12, %s5877_s19 }
  0x41   : > { %964 = vrot.lane.b32.xlu1 %v5987_v11, %s5877_s19 }
  0x43   : > { %1067 = vrot.lane.b32.xlu0 %v5982_v9, %s5878_s20 }
  0x45   : > { %1069 = vrot.lane.b32.xlu1 %v5991_v12, %s5878_s20 }
  0x47   : > { %1071 = vrot.lane.b32.xlu0 %v5987_v11, %s5878_s20 }
  0x49   : > { %1174 = vrot.lane.b32.xlu1 %v5982_v9, %s5879_s26 }
  0x4b   : > { %1176 = vrot.lane.b32.xlu0 %v5991_v12, %s5879_s26 }
  0x4d   : > { %1178 = vrot.lane.b32.xlu1 %v5987_v11, %s5879_s26 }
  0x4f   : > { %1323 = vrot.lane.b32.xlu0 %v6039_v14, %s5872_s14 }
  0x51   : > { %1325 = vrot.lane.b32.xlu1 %v6045_v16, %s5872_s14 }
  0x53   : > { %1327 = vrot.lane.b32.xlu0 %v6050_v17, %s5872_s14 }
  0x55   : > { %1519 = vrot.lane.b32.xlu1 %v6039_v14, %s5873_s15 }
  0x57   : > { %1521 = vrot.lane.b32.xlu0 %v6045_v16, %s5873_s15 }
  0x59   : > { %1523 = vrot.lane.b32.xlu1 %v6050_v17, %s5873_s15 }
  0x5b   : > { %1625 = vrot.lane.b32.xlu0 %v6039_v14, %s5874_s16 }
  0x5d   : > { %1627 = vrot.lane.b32.xlu1 %v6045_v16, %s5874_s16 }
  0x5f   : > { %1629 = vrot.lane.b32.xlu0 %v6050_v17, %s5874_s16 }
  0x61   : > { %1731 = vrot.lane.b32.xlu1 %v6039_v14, %s5875_s17 }
  0x63   : > { %1733 = vrot.lane.b32.xlu0 %v6045_v16, %s5875_s17 }
  0x65   : > { %1735 = vrot.lane.b32.xlu1 %v6050_v17, %s5875_s17 }
  0x67   : > { %1837 = vrot.lane.b32.xlu0 %v6039_v14, %s5876_s18 }
  0x69   : > { %1839 = vrot.lane.b32.xlu1 %v6045_v16, %s5876_s18 }
  0x6b   : > { %1841 = vrot.lane.b32.xlu0 %v6050_v17, %s5876_s18 }
  0x6d   : > { %1943 = vrot.lane.b32.xlu1 %v6039_v14, %s5877_s19 }
  0x6f   : > { %1945 = vrot.lane.b32.xlu0 %v6045_v16, %s5877_s19 }
  0x71   : > { %1947 = vrot.lane.b32.xlu1 %v6050_v17, %s5877_s19 }
  0x73   : > { %2049 = vrot.lane.b32.xlu0 %v6039_v14, %s5878_s20 }
  0x75   : > { %2051 = vrot.lane.b32.xlu1 %v6045_v16, %s5878_s20 }
  0x77   : > { %2053 = vrot.lane.b32.xlu0 %v6050_v17, %s5878_s20 }
  0x79   : > { %2155 = vrot.lane.b32.xlu1 %v6039_v14, %s5879_s26 }
  0x7b   : > { %2157 = vrot.lane.b32.xlu0 %v6045_v16, %s5879_s26 }
  0x7d   : > { %2159 = vrot.lane.b32.xlu1 %v6050_v17, %s5879_s26 }
  0x91   : > { %v334_v18 = vpop.permute.xlu0 %333 }
  0x93   : > { %v338_v19 = vpop.permute.xlu1 %337 }
  0x94   : > { %v354_v20 = vsel %vm346_vm1, %v338_v19, 0 }
  0x95   : > { %v336_v21 = vpop.permute.xlu0 %335  ;;  %5120 = vmatpush3.bf16.msra.mxu1 %v354_v20 }
  0x96   : > { %v341_v23 = vsel %vm339_vm2, %v336_v21, %v338_v19  ;;  %v340_v24 = vsel %vm339_vm2, %v334_v18, %v336_v21  ;;  %5125 = vmatprep.subr.bf16.mxu1 %v7273_v3 }
  0x97   : > { %4858 = vmatprep.subr.msk.bf16.mxu0 %vm346_vm1, %v341_v23  ;;  %v348_v26 = vsel %vm346_vm1, %v340_v24, 0  ;;  %v533_v27 = vpop.permute.xlu1 %532  ;;  %v4884_v24 = vld [vmem:[%s7260_s1 + $0x1c] sm:$0xf] }
  0x98   : > { %357 = vmatpush1.bf16.msra.mxu0 %v348_v26  ;;  %5122 = vmatmul.mubr.msk.bf16.vlgmr.msra.gmra.mrb[0].mxu1 %vm7269_vm3, %v4857_v22 }
  0x99   : > { %4861 = vmatprep.subr.msk.bf16.mxu0 %vm346_vm1, %v5991_v12  ;;  %5126 = vmatpush3.bf16.msra.mxu1 %v447_v25  ;;  %v535_v29 = vpop.permute.xlu0 %534 }
  0x9a   : > { %5127 = vmatprep.mubr.msk.bf16.mxu1 %vm5870_vm0, %v7273_v3  ;;  %5131 = vmatprep.subr.bf16.mxu1 %v7273_v3  ;;  %v539_v34 = vsel %vm538_vm4, %v533_v27, %v535_v29 }
  0x9b   : > { %4859 = vmatmul.mubr.msk.bf16.vlgmr.msra.gmra.mrb[0].mxu0 %vm7269_vm3, %v4857_v22  ;;  %v537_v30 = vpop.permute.xlu1 %536  ;;  %v545_v38 = vsel %vm346_vm1, %v539_v34, 0 }
  0x9c   : > { %450 = vmatpush1.bf16.msra.mxu0 %v441_v28  ;;  %481 = vmatprep.mubr.bf16.mxu0 %v7270_v7  ;;  %v540_v31 = vsel %vm538_vm4, %v535_v29, %v537_v30  ;;  %v551_v35 = vsel %vm346_vm1, %v537_v30, 0 }
  0x9d   : > { %4865 = vmatprep.subr.msk.bf16.mxu0 %vm346_vm1, %v540_v31  ;;  %v640_v32 = vpop.permute.xlu0 %639  ;;  %v4888_v31 = vld [vmem:[%s7260_s1 + $0x20] sm:$0xf] }
  0x9f   : > { %v642_v37 = vpop.permute.xlu1 %641 }
  0xa0   : > { %v646_v43 = vsel %vm7266_vm5, %v640_v32, %v642_v37 }
  0xa1   : > { %v644_v36 = vpop.permute.xlu0 %643  ;;  %v652_v46 = vsel %vm346_vm1, %v646_v43, 0 }
  0xa2   : > { %v647_v39 = vsel %vm7266_vm5, %v642_v37, %v644_v36  ;;  %v658_v42 = vsel %vm346_vm1, %v644_v36, 0  ;;  %v4894_v36 = vld [vmem:[%s7260_s1 + $0x28] sm:$0xf]  ;;  %v1434_v37 = vsel %vm346_vm1, %v6050_v17, 0  ;;  %v4893_v17 = vld [vmem:[%s7260_s1 + $0x24] sm:$0xf] }
  0xa3   : > { %v747_v40 = vpop.permute.xlu1 %746 }
  0xa4   : > { %5128 = vmatmul.mubr.msk.bf16.vlgmr.msra.gmra.mrb[0].mxu1 %vm7269_vm3, %v313_v33 }
  0xa5   : > { %5132 = vmatpush3.bf16.msra.mxu1 %v551_v35  ;;  %5133 = vmatprep.mubr.msk.bf16.mxu1 %vm5870_vm0, %v7273_v3  ;;  %v749_v44 = vpop.permute.xlu0 %748 }
  0xa6   : > { %5137 = vmatprep.subr.bf16.mxu1 %v7273_v3  ;;  %v753_v50 = vsel %vm752_vm6, %v747_v40, %v749_v44  ;;  %v1428_v40 = vsel %vm346_vm1, %v6039_v14, 0 }
  0xa7   : > { %4862 = vmatmul.mubr.msk.bf16.vlgmr.msra.gmra.mrb[0].mxu0 %vm7269_vm3, %v313_v33  ;;  %v751_v45 = vpop.permute.xlu1 %750  ;;  %v759_v54 = vsel %vm346_vm1, %v753_v50, 0 }
  0xa8   : > { %554 = vmatpush1.bf16.msra.mxu0 %v545_v38  ;;  %585 = vmatprep.mubr.bf16.mxu0 %v7270_v7  ;;  %v754_v47 = vsel %vm752_vm6, %v749_v44, %v751_v45  ;;  %v765_v51 = vsel %vm346_vm1, %v751_v45, 0 }
  0xa9   : > { %4869 = vmatprep.subr.msk.bf16.mxu0 %vm346_vm1, %v647_v39  ;;  %v854_v48 = vpop.permute.xlu0 %853 }
  0xab   : > { %v856_v53 = vpop.permute.xlu1 %855 }
  0xac   : > { %v860_v59 = vsel %vm859_vm7, %v854_v48, %v856_v53  ;;  %v4901_v48 = vld [vmem:[%s7260_s1 + $0x2c] sm:$0xf] }
  0xad   : > { %v858_v52 = vpop.permute.xlu0 %857  ;;  %v866_v62 = vsel %vm346_vm1, %v860_v59, 0 }
  0xae   : > { %v861_v55 = vsel %vm859_vm7, %v856_v53, %v858_v52  ;;  %v872_v58 = vsel %vm346_vm1, %v858_v52, 0 }
  0xaf   : > { %v961_v56 = vpop.permute.xlu1 %960 }
  0xb0   : > { %5134 = vmatmul.mubr.msk.bf16.vlgmr.msra.gmra.mrb[0].mxu1 %vm7269_vm3, %v4864_v41 }
  0xb1   : > { %5138 = vmatpush3.bf16.msra.mxu1 %v658_v42  ;;  %5139 = vmatprep.mubr.msk.bf16.mxu1 %vm5870_vm0, %v7273_v3  ;;  %v963_v60 = vpop.permute.xlu0 %962 }
  0xb2   : > { %5143 = vmatprep.subr.bf16.mxu1 %v7273_v3  ;;  %v967_v4 = vsel %vm966_vm8, %v961_v56, %v963_v60  ;;  %v4905_v56 = vld [vmem:[%s7260_s1 + $0x30] sm:$0xf] }
  0xb3   : > { %4866 = vmatmul.mubr.msk.bf16.vlgmr.msra.gmra.mrb[0].mxu0 %vm7269_vm3, %v4864_v41  ;;  %v965_v61 = vpop.permute.xlu1 %964  ;;  %v973_v10 = vsel %vm346_vm1, %v967_v4, 0 }
  0xb4   : > { %661 = vmatpush1.bf16.msra.mxu0 %v652_v46  ;;  %692 = vmatprep.mubr.bf16.mxu0 %v7270_v7  ;;  %v968_v63 = vsel %vm966_vm8, %v963_v60, %v965_v61  ;;  %v979_v5 = vsel %vm346_vm1, %v965_v61, 0 }
  0xb5   : > { %4873 = vmatprep.subr.msk.bf16.mxu0 %vm346_vm1, %v754_v47  ;;  %v1068_v1 = vpop.permute.xlu0 %1067 }
  0xb7   : > { %v1070_v9 = vpop.permute.xlu1 %1069 }
  0xb8   : > { %v1074_v18 = vsel %vm7268_vm9, %v1068_v1, %v1070_v9  ;;  %v4909_v1 = vld [vmem:[%s7260_s1 + $0x34] sm:$0xf] }
  0xb9   : > { %v1072_v8 = vpop.permute.xlu0 %1071  ;;  %v1080_v21 = vsel %vm346_vm1, %v1074_v18, 0 }
  0xba   : > { %v1075_v11 = vsel %vm7268_vm9, %v1070_v9, %v1072_v8  ;;  %v1086_v15 = vsel %vm346_vm1, %v1072_v8, 0 }
  0xbb   : > { %v1175_v12 = vpop.permute.xlu1 %1174 }
  0xbc   : > { %5140 = vmatmul.mubr.msk.bf16.vlgmr.msra.gmra.mrb[0].mxu1 %vm7269_vm3, %v4868_v49 }
  0xbd   : > { %5144 = vmatpush3.bf16.msra.mxu1 %v765_v51  ;;  %5145 = vmatprep.mubr.msk.bf16.mxu1 %vm5870_vm0, %v7273_v3  ;;  %v1177_v19 = vpop.permute.xlu0 %1176 }
  0xbe   : > { %5149 = vmatprep.subr.bf16.mxu1 %v7273_v3  ;;  %v1181_v25 = vsel %vm7267_vm10, %v1175_v12, %v1177_v19  ;;  %v4913_v12 = vld [vmem:[%s7260_s1 + $0x38] sm:$0xf] }
  0xbf   : > { %4870 = vmatmul.mubr.msk.bf16.vlgmr.msra.gmra.mrb[0].mxu0 %vm7269_vm3, %v4868_v49  ;;  %v1179_v20 = vpop.permute.xlu1 %1178  ;;  %v1187_v29 = vsel %vm346_vm1, %v1181_v25, 0 }
  0xc0   : > { %768 = vmatpush1.bf16.msra.mxu0 %v759_v54  ;;  %799 = vmatprep.mubr.bf16.mxu0 %v7270_v7  ;;  %v1182_v22 = vsel %vm7267_vm10, %v1177_v19, %v1179_v20  ;;  %v1193_v26 = vsel %vm346_vm1, %v1179_v20, 0 }
  0xc1   : > { %4877 = vmatprep.subr.msk.bf16.mxu0 %vm346_vm1, %v861_v55  ;;  %v1324_v23 = vpop.permute.xlu0 %1323 }
  0xc3   : > { %v1326_v28 = vpop.permute.xlu1 %1325 }
  0xc4   : > { %v1329_v33 = vsel %vm339_vm2, %v1324_v23, %v1326_v28  ;;  %v4917_v23 = vld [vmem:[%s7260_s1 + $0x3c] sm:$0xf] }
  0xc5   : > { %v1328_v27 = vpop.permute.xlu0 %1327  ;;  %v1335_v34 = vsel %vm346_vm1, %v1329_v33, 0 }
  0xc6   : > { %v1330_v30 = vsel %vm339_vm2, %v1326_v28, %v1328_v27  ;;  %v1341_v32 = vsel %vm346_vm1, %v1328_v27, 0 }
  0xc7   : > { %v1520_v35 = vpop.permute.xlu1 %1519 }
  0xc8   : > { %5146 = vmatmul.mubr.msk.bf16.vlgmr.msra.gmra.mrb[0].mxu1 %vm7269_vm3, %v4872_v57 }
  0xc9   : > { %5150 = vmatpush3.bf16.msra.mxu1 %v872_v58  ;;  %5151 = vmatprep.mubr.msk.bf16.mxu1 %vm5870_vm0, %v7273_v3  ;;  %v1522_v38 = vpop.permute.xlu0 %1521 }
  0xca   : > { %5155 = vmatprep.subr.bf16.mxu1 %v7273_v3  ;;  %v1525_v14 = vsel %vm538_vm4, %v1520_v35, %v1522_v38 }
  0xcb   : > { %4874 = vmatmul.mubr.msk.bf16.vlgmr.msra.gmra.mrb[0].mxu0 %vm7269_vm3, %v4872_v57  ;;  %v1524_v39 = vpop.permute.xlu1 %1523  ;;  %v1531_v45 = vsel %vm346_vm1, %v1525_v14, 0 }
  0xcc   : > { %875 = vmatpush1.bf16.msra.mxu0 %v866_v62  ;;  %906 = vmatprep.mubr.bf16.mxu0 %v7270_v7  ;;  %v1526_v41 = vsel %vm538_vm4, %v1522_v38, %v1524_v39  ;;  %v1537_v42 = vsel %vm346_vm1, %v1524_v39, 0 }
  0xcd   : > { %4881 = vmatprep.subr.msk.bf16.mxu0 %vm346_vm1, %v968_v63 }
  0xcf   : > { %v1628_v44 = vpop.permute.xlu1 %1627 }
  0xd3   : > { %v1732_v47 = vpop.permute.xlu1 %1731 }
  0xd4   : > { %5152 = vmatmul.mubr.msk.bf16.vlgmr.msra.gmra.mrb[0].mxu1 %vm7269_vm3, %v4876_v2 }
  0xd5   : > { %5156 = vmatpush3.bf16.msra.mxu1 %v979_v5  ;;  %5157 = vmatprep.mubr.msk.bf16.mxu1 %vm5870_vm0, %v7273_v3 }
  0xd6   : > { %5161 = vmatprep.subr.bf16.mxu1 %v7273_v3 }
  0xd7   : > { %4878 = vmatmul.mubr.msk.bf16.vlgmr.msra.gmra.mrb[0].mxu0 %vm7269_vm3, %v4876_v2  ;;  %v1736_v52 = vpop.permute.xlu1 %1735 }
  0xd8   : > { %982 = vmatpush1.bf16.msra.mxu0 %v973_v10  ;;  %1013 = vmatprep.mubr.bf16.mxu0 %v7270_v7  ;;  %v1749_v58 = vsel %vm346_vm1, %v1736_v52, 0 }
  0xd9   : > { %4885 = vmatprep.subr.msk.bf16.mxu0 %vm346_vm1, %v1075_v11 }
  0xdb   : > { %v1840_v60 = vpop.permute.xlu1 %1839 }
  0xdf   : > { %v1944_v63 = vpop.permute.xlu1 %1943 }
  0xe0   : > { %5158 = vmatmul.mubr.msk.bf16.vlgmr.msra.gmra.mrb[0].mxu1 %vm7269_vm3, %v4880_v13 }
  0xe1   : > { %5162 = vmatpush3.bf16.msra.mxu1 %v1086_v15  ;;  %5163 = vmatprep.mubr.msk.bf16.mxu1 %vm5870_vm0, %v7273_v3 }
  0xe2   : > { %5167 = vmatprep.subr.bf16.mxu1 %v7273_v3 }
  0xe3   : > { %4882 = vmatmul.mubr.msk.bf16.vlgmr.msra.gmra.mrb[0].mxu0 %vm7269_vm3, %v4880_v13  ;;  %v1948_v8 = vpop.permute.xlu1 %1947 }
  0xe4   : > { %1089 = vmatpush1.bf16.msra.mxu0 %v1080_v21  ;;  %1120 = vmatprep.mubr.bf16.mxu0 %v7270_v7  ;;  %v1961_v15 = vsel %vm346_vm1, %v1948_v8, 0 }
  0xe5   : > { %4889 = vmatprep.subr.msk.bf16.mxu0 %vm346_vm1, %v1182_v22 }
  0xe7   : > { %v2052_v19 = vpop.permute.xlu1 %2051 }
  0xeb   : > { %v2156_v22 = vpop.permute.xlu1 %2155 }
  0xec   : > { %5164 = vmatmul.mubr.msk.bf16.vlgmr.msra.gmra.mrb[0].mxu1 %vm7269_vm3, %v4884_v24 }
  0xed   : > { %5168 = vmatpush3.bf16.msra.mxu1 %v1193_v26  ;;  %5169 = vmatprep.mubr.msk.bf16.mxu1 %vm5870_vm0, %v7273_v3 }
  0xee   : > { %5173 = vmatprep.subr.bf16.mxu1 %v7273_v3 }
  0xef   : > { %4886 = vmatmul.mubr.msk.bf16.vlgmr.msra.gmra.mrb[0].mxu0 %vm7269_vm3, %v4884_v24  ;;  %v2160_v27 = vpop.permute.xlu1 %2159 }
  0xf0   : > { %1196 = vmatpush1.bf16.msra.mxu0 %v1187_v29  ;;  %1227 = vmatprep.mubr.bf16.mxu0 %v7270_v7 }
  0xf1   : > { %4895 = vmatprep.subr.msk.bf16.mxu0 %vm346_vm1, %v1330_v30  ;;  %v4921_v30 = vld [vmem:[%s7260_s1 + $0x40] sm:$0xf] }
  0xf8   : > { %5170 = vmatmul.mubr.msk.bf16.vlgmr.msra.gmra.mrb[0].mxu1 %vm7269_vm3, %v4888_v31 }
  0xf9   : > { %5174 = vmatpush3.bf16.msra.mxu1 %v1341_v32  ;;  %5175 = vmatprep.mubr.msk.bf16.mxu1 %vm5870_vm0, %v7273_v3  ;;  %v2173_v32 = vsel %vm346_vm1, %v2160_v27, 0 }
  0xfa   : > { %5179 = vmatprep.subr.bf16.mxu1 %v7273_v3 }
  0xfb   : > { %4890 = vmatmul.mubr.msk.bf16.vlgmr.msra.gmra.mrb[0].mxu0 %vm7269_vm3, %v4888_v31 }
  0xfc   : > { %1344 = vmatpush1.bf16.msra.mxu0 %v1335_v34  ;;  %1375 = vmatprep.mubr.bf16.mxu0 %v7270_v7  ;;  %v4925_v34 = vld [vmem:[%s7260_s1 + $0x44] sm:$0xf] }
  0xfd   : > { %4898 = vmatprep.subr.msk.bf16.mxu0 %vm346_vm1, %v6045_v16  ;;  %v1626_v16 = vpop.permute.xlu0 %1625 }
  0xfe   : > { %v1631_v50 = vsel %vm7266_vm5, %v1626_v16, %v1628_v44 }
  0xff   : > { %v1637_v53 = vsel %vm346_vm1, %v1631_v50, 0 }
 0x100   : > { %5176 = vmatmul.mubr.msk.bf16.vlgmr.msra.gmra.mrb[4].mxu1 %vm7269_vm3, %v4894_v36 }
 0x101   : > { %5180 = vmatpush3.bf16.msra.mxu1 %v1434_v37  ;;  %5181 = vmatprep.mubr.msk.bf16.mxu1 %vm5870_vm0, %v7273_v3  ;;  %v1630_v43 = vpop.permute.xlu0 %1629 }
 0x102   : > { %5185 = vmatprep.subr.bf16.mxu1 %v7273_v3  ;;  %v1632_v46 = vsel %vm7266_vm5, %v1628_v44, %v1630_v43  ;;  %v1643_v49 = vsel %vm346_vm1, %v1630_v43, 0 }
 0x103   : > { %4896 = vmatmul.mubr.msk.bf16.vlgmr.msra.gmra.mrb[4].mxu0 %vm7269_vm3, %v4894_v36 }
 0x104   : > { %1437 = vmatpush1.bf16.msra.mxu0 %v1428_v40  ;;  %1468 = vmatprep.mubr.bf16.mxu0 %v7270_v7 }
 0x105   : > { %4902 = vmatprep.subr.msk.bf16.mxu0 %vm346_vm1, %v1526_v41  ;;  %v1734_v51 = vpop.permute.xlu0 %1733 }
 0x106   : > { %v1738_v54 = vsel %vm752_vm6, %v1734_v51, %v1736_v52  ;;  %v1737_v57 = vsel %vm752_vm6, %v1732_v47, %v1734_v51 }
 0x107   : > { %v1743_v61 = vsel %vm346_vm1, %v1737_v57, 0 }
 0x109   : > { %v1838_v55 = vpop.permute.xlu0 %1837 }
 0x10a   : > { %v1843_v4 = vsel %vm859_vm7, %v1838_v55, %v1840_v60 }
 0x10b   : > { %v1849_v9 = vsel %vm346_vm1, %v1843_v4, 0 }
 0x10c   : > { %5182 = vmatmul.mubr.msk.bf16.vlgmr.msra.gmra.mrb[4].mxu1 %vm7269_vm3, %v4893_v17 }
 0x10d   : > { %5186 = vmatpush3.bf16.msra.mxu1 %v1537_v42  ;;  %5187 = vmatprep.mubr.msk.bf16.mxu1 %vm5870_vm0, %v7273_v3  ;;  %v1842_v59 = vpop.permute.xlu0 %1841 }
 0x10e   : > { %5191 = vmatprep.subr.bf16.mxu1 %v7273_v3  ;;  %v1844_v62 = vsel %vm859_vm7, %v1840_v60, %v1842_v59  ;;  %v1855_v2 = vsel %vm346_vm1, %v1842_v59, 0 }
 0x10f   : > { %4899 = vmatmul.mubr.msk.bf16.vlgmr.msra.gmra.mrb[4].mxu0 %vm7269_vm3, %v4893_v17  ;;  %v4937_v17 = vld [vmem:[%s5978_s13 + $0xc] sm:$0x3f] }
 0x110   : > { %1540 = vmatpush1.bf16.msra.mxu0 %v1531_v45  ;;  %1571 = vmatprep.mubr.bf16.mxu0 %v7270_v7  ;;  %v6356_v14 = vrot.slane %v4937_v17, %v5971_v6  ;;  %v2562_v43 = vcombine.high %v4937_v17, %v4937_v17 }
 0x111   : > { %4906 = vmatprep.subr.msk.bf16.mxu0 %vm346_vm1, %v1632_v46  ;;  %v1946_v5 = vpop.permute.xlu0 %1945 }
 0x112   : > { %v1950_v10 = vsel %vm966_vm8, %v1946_v5, %v1948_v8  ;;  %v1949_v13 = vsel %vm966_vm8, %v1944_v63, %v1946_v5  ;;  %2578 = vrot.lane.b32.xlu1 %v6356_v14, %s5872_s14  ;;  %v6362_v42 = vcombine.high %v6356_v14, %v6356_v14  ;;  %v6367_v44 = vrot.slane %v2562_v43, %v5971_v6 }
 0x113   : > { %v1955_v20 = vsel %vm346_vm1, %v1949_v13, 0 }
 0x115   : > { %v2050_v11 = vpop.permute.xlu0 %2049 }
 0x116   : > { %v2055_v25 = vsel %vm7268_vm9, %v2050_v11, %v2052_v19  ;;  %2580 = vrot.lane.b32.xlu1 %v6362_v42, %s5872_s14 }
 0x117   : > { %v2061_v28 = vsel %vm346_vm1, %v2055_v25, 0 }
 0x118   : > { %5188 = vmatmul.mubr.msk.bf16.vlgmr.msra.gmra.mrb[4].mxu1 %vm7269_vm3, %v4901_v48 }
 0x119   : > { %5192 = vmatpush3.bf16.msra.mxu1 %v1643_v49  ;;  %5193 = vmatprep.mubr.msk.bf16.mxu1 %vm5870_vm0, %v7273_v3  ;;  %v2054_v18 = vpop.permute.xlu0 %2053 }
 0x11a   : > { %5197 = vmatprep.subr.bf16.mxu1 %v7273_v3  ;;  %v2056_v21 = vsel %vm7268_vm9, %v2052_v19, %v2054_v18  ;;  %v2067_v24 = vsel %vm346_vm1, %v2054_v18, 0  ;;  %2582 = vrot.lane.b32.xlu1 %v6367_v44, %s5872_s14 }
 0x11b   : > { %4903 = vmatmul.mubr.msk.bf16.vlgmr.msra.gmra.mrb[4].mxu0 %vm7269_vm3, %v4901_v48  ;;  %v258_v48 = vand.u32 127, %v257_v0 }
 0x11c   : > { %1646 = vmatpush1.bf16.msra.mxu0 %v1637_v53  ;;  %1677 = vmatprep.mubr.bf16.mxu0 %v7270_v7 }
 0x11d   : > { %4910 = vmatprep.subr.msk.bf16.mxu0 %vm346_vm1, %v1738_v54  ;;  %v2158_v26 = vpop.permute.xlu0 %2157  ;;  %v260_v52 = vadd.s32 256, %v258_v48 }
 0x11e   : > { %v2162_v29 = vsel %vm7267_vm10, %v2158_v26, %v2160_v27  ;;  %v2161_v31 = vsel %vm7267_vm10, %v2156_v22, %v2158_v26  ;;  %2773 = vrot.lane.b32.xlu1 %v6356_v14, %s5873_s15 }
 0x11f   : > { %v2167_v33 = vsel %vm346_vm1, %v2161_v31, 0 }
 0x122   : > { %2775 = vrot.lane.b32.xlu1 %v6362_v42, %s5873_s15 }
 0x124   : > { %5194 = vmatmul.mubr.msk.bf16.vlgmr.msra.gmra.mrb[4].mxu1 %vm7269_vm3, %v4905_v56 }
 0x125   : > { %5198 = vmatpush3.bf16.msra.mxu1 %v1749_v58  ;;  %5199 = vmatprep.mubr.msk.bf16.mxu1 %vm5870_vm0, %v7273_v3 }
 0x126   : > { %5203 = vmatprep.subr.bf16.mxu1 %v7273_v3  ;;  %2777 = vrot.lane.b32.xlu1 %v6367_v44, %s5873_s15 }
 0x127   : > { %4907 = vmatmul.mubr.msk.bf16.vlgmr.msra.gmra.mrb[4].mxu0 %vm7269_vm3, %v4905_v56  ;;  %v259_v56 = vadd.s32 128, %v258_v48 }
 0x128   : > { %1752 = vmatpush1.bf16.msra.mxu0 %v1743_v61  ;;  %1783 = vmatprep.mubr.bf16.mxu0 %v7270_v7  ;;  %v6410_v61 = vmul.u32.u64.low 3817748708, %v260_v52  ;;  %v6411_v0 = vmul.u32.u64.high 3817748708, %v260_v52, %v6410_v61 }
 0x129   : > { %4914 = vmatprep.subr.msk.bf16.mxu0 %vm346_vm1, %v1844_v62 }
 0x12a   : > { %2878 = vrot.lane.b32.xlu1 %v6356_v14, %s5874_s16 }
 0x12e   : > { %2880 = vrot.lane.b32.xlu1 %v6362_v42, %s5874_s16 }
 0x130   : > { %5200 = vmatmul.mubr.msk.bf16.vlgmr.msra.gmra.mrb[4].mxu1 %vm7269_vm3, %v4909_v1 }
 0x131   : > { %5204 = vmatpush3.bf16.msra.mxu1 %v1855_v2  ;;  %5205 = vmatprep.mubr.msk.bf16.mxu1 %vm5870_vm0, %v7273_v3 }
 0x132   : > { %5209 = vmatprep.subr.bf16.mxu1 %v7273_v3  ;;  %2983 = vrot.lane.b32.xlu1 %v6356_v14, %s5875_s17 }
 0x133   : > { %4911 = vmatmul.mubr.msk.bf16.vlgmr.msra.gmra.mrb[4].mxu0 %vm7269_vm3, %v4909_v1  ;;  %v6416_v1 = vmul.u32.u64.low 3817748708, %v258_v48  ;;  %v6417_v2 = vmul.u32.u64.high 3817748708, %v258_v48, %v6416_v1 }
 0x134   : > { %1858 = vmatpush1.bf16.msra.mxu0 %v1849_v9  ;;  %1889 = vmatprep.mubr.bf16.mxu0 %v7270_v7  ;;  %v6420_v8 = vmul.u32.u64.low 3817748708, %v259_v56  ;;  %v6421_v9 = vmul.u32.u64.high 3817748708, %v259_v56, %v6420_v8 }
 0x135   : > { %4918 = vmatprep.subr.msk.bf16.mxu0 %vm346_vm1, %v1950_v10  ;;  %v267_v19 = vshrl.u32 %v6417_v2, 4 }
 0x136   : > { %2985 = vrot.lane.b32.xlu1 %v6362_v42, %s5875_s17  ;;  %v278_v22 = vshrl.u32 %v6421_v9, 4  ;;  %v6490_v9 = vld [vmem:[%s7261_s2] sm:$0xff] }
 0x137   : > { %7322 = vst [vmem:[#allocation14_spill] sm:$0xff] %v6490_v9 }
 0x13a   : > { %2987 = vrot.lane.b32.xlu1 %v6367_v44, %s5875_s17 }
 0x13c   : > { %5206 = vmatmul.mubr.msk.bf16.vlgmr.msra.gmra.mrb[4].mxu1 %vm7269_vm3, %v4913_v12 }
 0x13d   : > { %5210 = vmatpush3.bf16.msra.mxu1 %v1961_v15  ;;  %5211 = vmatprep.mubr.msk.bf16.mxu1 %vm5870_vm0, %v7273_v3  ;;  %v289_v15 = vshrl.u32 %v6411_v0, 4  ;;  %v7313_v0 = vmov 0 }
 0x13e   : > { %5215 = vmatprep.subr.bf16.mxu1 %v7273_v3  ;;  %3088 = vrot.lane.b32.xlu1 %v6356_v14, %s5876_s18 }
 0x13f   : > { %4915 = vmatmul.mubr.msk.bf16.vlgmr.msra.gmra.mrb[4].mxu0 %vm7269_vm3, %v4913_v12  ;;  %v290_v25 = vmul.u32 18, %v289_v15 }
 0x140   : > { %1964 = vmatpush1.bf16.msra.mxu0 %v1955_v20  ;;  %1995 = vmatprep.mubr.bf16.mxu0 %v7270_v7 }
 0x141   : > { %4922 = vmatprep.subr.msk.bf16.mxu0 %vm346_vm1, %v2056_v21 }
 0x142   : > { %3090 = vrot.lane.b32.xlu1 %v6362_v42, %s5876_s18 }
 0x146   : > { %3092 = vrot.lane.b32.xlu1 %v6367_v44, %s5876_s18 }
 0x148   : > { %5212 = vmatmul.mubr.msk.bf16.vlgmr.msra.gmra.mrb[4].mxu1 %vm7269_vm3, %v4917_v23 }
 0x149   : > { %5216 = vmatpush3.bf16.msra.mxu1 %v2067_v24  ;;  %5217 = vmatprep.mubr.msk.bf16.mxu1 %vm5870_vm0, %v7273_v3 }
 0x14a   : > { %5221 = vmatprep.subr.bf16.mxu1 %v7273_v3  ;;  %3195 = vrot.lane.b32.xlu1 %v6362_v42, %s5877_s19 }
 0x14b   : > { %4919 = vmatmul.mubr.msk.bf16.vlgmr.msra.gmra.mrb[4].mxu0 %vm7269_vm3, %v4917_v23 }
 0x14c   : > { %2070 = vmatpush1.bf16.msra.mxu0 %v2061_v28  ;;  %2101 = vmatprep.mubr.bf16.mxu0 %v7270_v7  ;;  %v268_v28 = vmul.u32 18, %v267_v19 }
 0x14d   : > { %4926 = vmatprep.subr.msk.bf16.mxu0 %vm346_vm1, %v2162_v29  ;;  %v279_v29 = vmul.u32 18, %v278_v22 }
 0x14e   : > { %3298 = vrot.lane.b32.xlu1 %v6356_v14, %s5878_s20 }
 0x152   : > { %3302 = vrot.lane.b32.xlu1 %v6367_v44, %s5878_s20 }
 0x154   : > { %5218 = vmatmul.mubr.msk.bf16.vlgmr.msra.gmra.mrb[4].mxu1 %vm7269_vm3, %v4921_v30 }
 0x155   : > { %5222 = vmatpush3.bf16.msra.mxu1 %v2173_v32  ;;  %5223 = vmatprep.mubr.msk.bf16.mxu1 %vm5870_vm0, %v7273_v3 }
 0x156   : > { %3405 = vrot.lane.b32.xlu1 %v6362_v42, %s5879_s26 }
 0x157   : > { %4923 = vmatmul.mubr.msk.bf16.vlgmr.msra.gmra.mrb[4].mxu0 %vm7269_vm3, %v4921_v30 }
 0x158   : > { %2176 = vmatpush1.bf16.msra.mxu0 %v2167_v33  ;;  %2207 = vmatprep.mubr.bf16.mxu0 %v7270_v7  ;;  %v291_v33 = vsub.s32 %v260_v52, %v290_v25 }
 0x15a   : > { %vm296_vm11 = vcmp.ne.s32.totalorder %v291_v33, 0  ;;  %vm299_vm12 = vcmp.lt.s32.totalorder %v291_v33, 0 }
 0x15b   : > { %vm6426_vm10 = vmand %vm299_vm12, %vm296_vm11  ;;  %vm2301_vm11 = vcmask 64512   ;;  %vm7326_vm12 = vcmask 31744  }
 0x160   : > { %5224 = vmatmul.mubr.msk.bf16.vlgmr.msra.gmra.mrb[4].mxu1 %vm7269_vm3, %v4925_v34 }
 0x163   : > { %4927 = vmatmul.mubr.msk.bf16.vlgmr.msra.gmra.mrb[4].mxu0 %vm7269_vm3, %v4925_v34 }
 0x164   : > { %5229 = vmatprep.mubr.msk.f32.mxu0 %vm2301_vm11, %v6490_v9  ;;  %v6953_v9 = vld [vmem:[%s7262_s3 + $0x18] sm:$0xff] }
 0x165   : > { %7364 = vst [vmem:[#allocation33_spill] sm:$0xff] %v6953_v9 }
 0x1cb   : > { %v6348_v35 = vpop.f32.mrb[0].mxu1 }
 0x1cc   : > { %v5171_v36 = vpop.f32.mrb[1].mxu1  ;;  %v1281_v45 = vsub.f32 0.0, %v6348_v35 }
 0x1cd   : > { %v1273_v37 = vpop.f32.mrb[2].mxu1  ;;  %v269_v36 = vsub.s32 %v258_v48, %v268_v28 }
 0x1ce   : > { %v6350_v38 = vpop.f32.mrb[0].mxu0  ;;  %v5172_v39 = vpop.f32.mrb[3].mxu1  ;;  %v1286_v49 = vmul.f32 1.442695, %v1281_v45  ;;  %v280_v37 = vsub.s32 %v259_v56, %v279_v29 }
 0x1cf   : > { %v6352_v40 = vpop.f32.mrb[1].mxu0  ;;  %v1279_v46 = vsub.f32 0.0, %v6350_v38  ;;  %vm294_vm13 = vcmp.ne.s32.totalorder %v269_v36, 0  ;;  %vm297_vm14 = vcmp.lt.s32.totalorder %v269_v36, 0 }
 0x1d0   : > { %v1233_v41 = vpop.f32.mrb[2].mxu0  ;;  %v1280_v47 = vsub.f32 0.0, %v6352_v40  ;;  %5712 = vpow2.f32 %v1286_v49  ;;  %vm295_vm15 = vcmp.ne.s32.totalorder %v280_v37, 0  ;;  %vm298_vm5 = vcmp.lt.s32.totalorder %v280_v37, 0  ;;  %vm6430_vm9 = vmand %vm297_vm14, %vm294_vm13 }
 0x1d1   : > { %v1234_v16 = vpop.f32.mrb[3].mxu0  ;;  %v1282_v50 = vmul.f32 1.442695, %v1279_v46  ;;  %v303_v41 = vadd.s32 18, %v269_v36  ;;  %v304_v45 = vadd.s32 18, %v280_v37  ;;  %vm6434_vm3 = vmand %vm298_vm5, %vm295_vm15  ;;  %vm7327_vm13 = vcmask 744448  }
 0x1d2   : > { %v1284_v51 = vmul.f32 1.442695, %v1280_v47  ;;  %v305_v16 = vadd.s32 18, %v291_v33  ;;  %v6610_v47 = vld [vmem:[%s7261_s2 + $0x10] sm:$0xff]  ;;  %vm7328_vm14 = vmmov %vm7327_vm13  ;;  %vm7329_vm15 = vcmask 736256  }
 0x1d3   : > { %5714 = vpow2.f32 %v1282_v50  ;;  %v306_v52 = vsel %vm6430_vm9, %v303_v41, %v269_v36  ;;  %v307_v56 = vsel %vm6434_vm3, %v304_v45, %v280_v37  ;;  %7324 = vst [vmem:[#allocation16_spill] sm:$0xff] %v6610_v47 }
 0x1d4   : > { %5716 = vpow2.f32 %v1284_v51  ;;  %vm6464_vm5 = vcmp.lt.s32.totalorder %v306_v52, 16  ;;  %vm6474_vm9 = vcmp.lt.s32.totalorder %v307_v56, 16 }
 0x1d5   : > { %v7314_v0 = vsel %vm6464_vm5, 4294967295, %v7313_v0 }
 0x1d6   : > { %7315 = vst [vmem:[#allocation11_spill] sm:$0xff] %v7314_v0 }
 0x1da   : > { %v5713_v13 = vpop.eup %5712 }
 0x1db   : > { %v1290_v21 = vadd.f32 1.0, %v5713_v13 }
 0x1dd   : > { %v5715_v18 = vpop.eup %5714 }
 0x1de   : > { %v5717_v20 = vpop.eup %5716  ;;  %v1288_v24 = vadd.f32 1.0, %v5715_v18 }
 0x1df   : > { %v1289_v26 = vadd.f32 1.0, %v5717_v20 }
 0x233   : > { %v6405_v53 = vpop.f32.mrb[4].mxu1 }
 0x234   : > { %v2261_v54 = vsub.f32 0.0, %v6405_v53  ;;  %v5225_v55 = vpop.f32.mrb[5].mxu1 }
 0x235   : > { %v2253_v57 = vpop.f32.mrb[6].mxu1 }
 0x236   : > { %v2266_v58 = vmul.f32 1.442695, %v2261_v54  ;;  %v6408_v59 = vpop.f32.mrb[4].mxu0  ;;  %v5226_v60 = vpop.f32.mrb[7].mxu1  ;;  %v308_v54 = vsel %vm6426_vm10, %v305_v16, %v291_v33  ;;  %vm2287_vm10 = vcmask 261120  }
 0x237   : > { %v2259_v62 = vsub.f32 0.0, %v6408_v59  ;;  %v6414_v63 = vpop.f32.mrb[5].mxu0  ;;  %vm6468_vm3 = vcmp.lt.s32.totalorder %v308_v54, 16  ;;  %v6625_v54 = vld [vmem:[%s7261_s2 + $0x18] sm:$0xff] }
 0x238   : > { %5718 = vpow2.f32 %v2266_v58  ;;  %v2260_v4 = vsub.f32 0.0, %v6414_v63  ;;  %v2213_v5 = vpop.f32.mrb[6].mxu0  ;;  %7325 = vst [vmem:[#allocation17_spill] sm:$0xff] %v6625_v54 }
 0x239   : > { %v2262_v10 = vmul.f32 1.442695, %v2259_v62  ;;  %v2214_v11 = vpop.f32.mrb[7].mxu0  ;;  %v7316_v62 = vmov 0 }
 0x23a   : > { %v2264_v12 = vmul.f32 1.442695, %v2260_v4  ;;  %v7317_v62 = vsel %vm6468_vm3, 4294967295, %v7316_v62  ;;  %v2579_v11 = vpop.permute.xlu1 %2578 }
 0x23b   : > { %5720 = vpow2.f32 %v2262_v10  ;;  %7318 = vst [vmem:[#allocation12_spill] sm:$0xff] %v7317_v62  ;;  %v4973_v10 = vld [vmem:[%s5978_s13 + $0x12] sm:$0x3f]  ;;  %s7140_s13 = scalar_lea.vmem [#allocation2], %s5645_s29 }
 0x23c   : > { %5722 = vpow2.f32 %v2264_v12  ;;  %v6498_v12 = vrot.slane %v4973_v10, %v5971_v6  ;;  %v3533_v13 = vcombine.high %v4973_v10, %v4973_v10 }
 0x23d   : > { %5724 = vrcp.f32 %v1290_v21 }
 0x23e   : > { %3549 = vrot.lane.b32.xlu1 %v6498_v12, %s5872_s14  ;;  %v6503_v15 = vrot.slane %v3533_v13, %v5971_v6  ;;  %v2581_v18 = vpop.permute.xlu1 %2580  ;;  %v6519_v6 = vcombine.high %v6498_v12, %v6498_v12 }
 0x23f   : > { %v6508_v19 = vsel %vm339_vm2, %v2579_v11, %v2581_v18  ;;  %v6668_v11 = vld [vmem:[%s7260_s1] sm:$0xf] }
 0x242   : > { %v5719_v23 = vpop.eup %5718  ;;  %3553 = vrot.lane.b32.xlu1 %v6503_v15, %s5872_s14  ;;  %v2583_v20 = vpop.permute.xlu1 %2582 }
 0x243   : > { %v2270_v27 = vadd.f32 1.0, %v5719_v23  ;;  %v6515_v21 = vsel %vm339_vm2, %v2581_v18, %v2583_v20 }
 0x245   : > { %v5721_v30 = vpop.eup %5720  ;;  %5726 = vrcp.f32 %v2270_v27 }
 0x246   : > { %v5723_v31 = vpop.eup %5722  ;;  %5728 = vrcp.f32 %v1288_v24  ;;  %v2268_v32 = vadd.f32 1.0, %v5721_v30  ;;  %3746 = vrot.lane.b32.xlu1 %v6519_v6, %s5873_s15  ;;  %v2774_v22 = vpop.permute.xlu1 %2773 }
 0x247   : > { %5730 = vrcp.f32 %v1289_v26  ;;  %v2269_v34 = vadd.f32 1.0, %v5723_v31  ;;  %v5725_v17 = vpop.eup %5724 }
 0x248   : > { %5732 = vrcp.f32 %v2268_v32  ;;  %v6442_v51 = vmul.f32 %v5725_v17, %v6348_v35 }
 0x249   : > { %5734 = vrcp.f32 %v2269_v34 }
 0x24a   : > { %7308 = vst [vmem:[#allocation6_spill] sm:$0xff] %v6442_v51  ;;  %3849 = vrot.lane.b32.xlu1 %v6498_v12, %s5874_s16  ;;  %v2776_v23 = vpop.permute.xlu1 %2775 }
 0x24b   : > { %v6530_v24 = vsel %vm538_vm4, %v2774_v22, %v2776_v23 }
 0x24e   : > { %3853 = vrot.lane.b32.xlu1 %v6503_v15, %s5874_s16  ;;  %v6536_v25 = vpop.permute.xlu1 %2777 }
 0x24f   : > { %v5727_v46 = vpop.eup %5726  ;;  %v6540_v26 = vsel %vm538_vm4, %v2776_v23, %v6536_v25  ;;  %v2791_v13 = vsel %vm346_vm1, %v6536_v25, 0 }
 0x250   : > { %v5729_v48 = vpop.eup %5728  ;;  %v6439_v49 = vmul.f32 %v5727_v46, %v6405_v53  ;;  %v6605_v46 = vld [vmem:[%s7261_s2 + $0x8] sm:$0xff] }
 0x251   : > { %v5731_v50 = vpop.eup %5730  ;;  %v6451_v58 = vmul.f32 %v5729_v48, %v6350_v38  ;;  %7323 = vst [vmem:[#allocation15_spill] sm:$0xff] %v6605_v46  ;;  %v2596_v48 = vsel %vm346_vm1, %v2583_v20, 0 }
 0x252   : > { %7307 = vst [vmem:[#allocation5_spill] sm:$0xff] %v6439_v49  ;;  %v5733_v55 = vpop.eup %5732  ;;  %v2279_v53 = vadd.f32 %v6439_v49, %v6442_v51  ;;  %v6459_v60 = vmul.f32 %v5731_v50, %v6352_v40  ;;  %3956 = vrot.lane.b32.xlu1 %v6519_v6, %s5875_s17  ;;  %v6550_v27 = vpop.permute.xlu1 %2878  ;;  %v6940_v49 = vld [vmem:[%s7262_s3 + $0x8] sm:$0xff] }
 0x253   : > { %v5735_v57 = vpop.eup %5734  ;;  %7309 = vst [vmem:[#allocation7_spill] sm:$0xff] %v6451_v58  ;;  %v6456_v35 = vmul.f32 %v5733_v55, %v6408_v59  ;;  %v7319_v59 = vmov 0  ;;  %7362 = vst [vmem:[#allocation31_spill] sm:$0xff] %v6940_v49 }
 0x254   : > { %7311 = vst [vmem:[#allocation9_spill] sm:$0xff] %v6459_v60  ;;  %v6462_v61 = vmul.f32 %v5735_v57, %v6414_v63  ;;  %v7320_v59 = vsel %vm6474_vm9, 4294967295, %v7319_v59  ;;  %v2285_v1 = vsel %vm6468_vm3, %v2279_v53, 0.0  ;;  %v6638_v53 = vld [vmem:[%s7260_s1 + $0x4] sm:$0xf] }
 0x255   : > { %7310 = vst [vmem:[#allocation8_spill] sm:$0xff] %v6456_v35  ;;  %v2277_v38 = vadd.f32 %v6456_v35, %v6451_v58  ;;  %7321 = vst [vmem:[#allocation13_spill] sm:$0xff] %v7320_v59  ;;  %v2288_v5 = vsel %vm2287_vm10, %v2285_v1, 0.0  ;;  %v6856_v59 = vld [vmem:[%s7260_s1 + $0x2c] sm:$0xf] }
 0x256   : > { %7312 = vst [vmem:[#allocation10_spill] sm:$0xff] %v6462_v61  ;;  %v2278_v40 = vadd.f32 %v6462_v61, %v6459_v60  ;;  %4059 = vrot.lane.b32.xlu1 %v6498_v12, %s5876_s18  ;;  %v6556_v28 = vpop.permute.xlu1 %2880  ;;  %v6922_v61 = vld [vmem:[%s7260_s1 + $0x40] sm:$0xf] }
 0x257   : > { %v2283_v63 = vsel %vm6464_vm5, %v2277_v38, 0.0  ;;  %v2689_v38 = vsel %vm346_vm1, %v6367_v44, 0  ;;  %7359 = vst [vmem:[#allocation29_spill] sm:$0xff] %v6922_v61 }
 0x258   : > { %v2284_v2 = vsel %vm6474_vm9, %v2278_v40, 0.0 }
 0x259   : > { %v2286_v4 = vadd.f32 %v2284_v2, %v2283_v63 }
 0x25a   : > { %4063 = vrot.lane.b32.xlu1 %v6503_v15, %s5876_s18  ;;  %v2984_v29 = vpop.permute.xlu1 %2983 }
 0x25b   : > { %v2289_v8 = vadd.f32 %v2288_v5, %v2286_v4 }
 0x25d   : > { %2290 = vadd.xlane.f32.xlu0 %v2289_v8 }
 0x25e   : > { %4166 = vrot.lane.b32.xlu1 %v6519_v6, %s5877_s19  ;;  %v2986_v30 = vpop.permute.xlu1 %2985 }
 0x25f   : > { %v6567_v31 = vsel %vm752_vm6, %v2984_v29, %v2986_v30 }
 0x262   : > { %4269 = vrot.lane.b32.xlu1 %v6498_v12, %s5878_s20  ;;  %v6573_v32 = vpop.permute.xlu1 %2987 }
 0x263   : > { %v6577_v33 = vsel %vm752_vm6, %v2986_v30, %v6573_v32 }
 0x266   : > { %4273 = vrot.lane.b32.xlu1 %v6503_v15, %s5878_s20  ;;  %v3089_v34 = vpop.permute.xlu1 %3088 }
 0x26a   : > { %4376 = vrot.lane.b32.xlu1 %v6519_v6, %s5879_s26  ;;  %v3091_v36 = vpop.permute.xlu1 %3090 }
 0x26b   : > { %v6586_v37 = vsel %vm859_vm7, %v3089_v34, %v3091_v36 }
 0x26e   : > { %v6588_v39 = vpop.permute.xlu1 %3092 }
 0x26f   : > { %v6594_v41 = vsel %vm859_vm7, %v3091_v36, %v6588_v39 }
 0x272   : > { %v3196_v16 = vpop.permute.xlu1 %3195 }
 0x273   : > { %2882 = vrot.lane.b32.xlu0 %v6367_v44, %s5874_s16 }
 0x276   : > { %v3299_v17 = vpop.permute.xlu1 %3298 }
 0x277   : > { %3193 = vrot.lane.b32.xlu0 %v6356_v14, %s5877_s19 }
 0x27a   : > { %v6615_v52 = vpop.permute.xlu1 %3302 }
 0x27b   : > { %3197 = vrot.lane.b32.xlu0 %v6367_v44, %s5877_s19 }
 0x27e   : > { %v3406_v56 = vpop.permute.xlu1 %3405 }
 0x27f   : > { %3300 = vrot.lane.b32.xlu0 %v6362_v42, %s5878_s20 }
 0x283   : > { %3403 = vrot.lane.b32.xlu0 %v6356_v14, %s5879_s26 }
 0x287   : > { %3407 = vrot.lane.b32.xlu0 %v6367_v44, %s5879_s26 }
 0x28b   : > { %3551 = vrot.lane.b32.xlu0 %v6519_v6, %s5872_s14  ;;  %s5653_s14 = smul.u32 384, %s5939_s25  ;;  %s7218_s25 = scalar_lea.sflag [#allocation3], %s245_s28 }
 0x28f   : > { %3744 = vrot.lane.b32.xlu0 %v6498_v12, %s5873_s15 }
 0x293   : > { %3748 = vrot.lane.b32.xlu0 %v6503_v15, %s5873_s15  ;;  %s4789_s15 = sshll.u32 %s7140_s13, 4  ;;  %s7211_s15 = int_to_ptr.vmem [resolvable:$true] %s4789_s15 }
 0x297   : > { %3851 = vrot.lane.b32.xlu0 %v6519_v6, %s5874_s16 }
 0x29b   : > { %3954 = vrot.lane.b32.xlu0 %v6498_v12, %s5875_s17 }
 0x29f   : > { %3958 = vrot.lane.b32.xlu0 %v6503_v15, %s5875_s17 }
 0x2a3   : > { %4061 = vrot.lane.b32.xlu0 %v6519_v6, %s5876_s18  ;;  %s7209_s18 = scalar_lea.hbm %s7265_s6, %s5653_s14 }
 0x2a7   : > { %4164 = vrot.lane.b32.xlu0 %v6498_v12, %s5877_s19 }
 0x2ab   : > { %4168 = vrot.lane.b32.xlu0 %v6503_v15, %s5877_s19  ;;  %s5804_s19 = scalar_lea.vmem %s7211_s15, 384 }
 0x2ac   : > { %p5805_p11 = scmp.ne.s32.totalorder %s7211_s15, %s5804_s19 }
 0x2ae   : > { %p5806_p12 = pnand %p5805_p11, %p5956_p5 }
 0x2af   : > { %4271 = vrot.lane.b32.xlu0 %v6519_v6, %s5878_s20  ;;  %s5880_s20 = smov [#allocation2]  }
 0x2b0   : > { %v3550_v1 = vpop.permute.xlu1 %3549  ;;  %p5807_p13 = pneg %p5806_p12 }
 0x2b3   : > { %4374 = vrot.lane.b32.xlu0 %v6498_v12, %s5879_s26 }
 0x2b4   : > { %v6660_v8 = vpop.permute.xlu1 %3553 }
 0x2b7   : > { %4378 = vrot.lane.b32.xlu0 %v6503_v15, %s5879_s26  ;;  %s5808_s26 = sshll.u32 %s5880_s20, 4  ;;  %s5809_s26 = int_to_ptr.vmem [resolvable:$false] %s5808_s26 }
 0x2b8   : > { %v3747_v20 = vpop.permute.xlu1 %3746  ;;  %s5810_s9 = scalar_lea.vmem %s5809_s26, 768  ;;  %p5811_p0 = scmp.lt.s32.totalorder %s7211_s15, %s5809_s26 }
 0x2b9   : > { %p5812_p1 = scmp.lt.s32.totalorder %s5810_s9, %s5804_s19 }
 0x2bb   : > { %p5813_p2 = por %p5812_p1, %p5811_p0 }
 0x2bc   : > { %v3850_v30 = vpop.permute.xlu1 %3849 }
 0x2bd   : > { %p5814_p3 = pnand %p5813_p2, %p5807_p13 }
 0x2ea   : > { %v2291_v43 = vpop.xlane.xlu0 %2290 }
 0x2eb   : > { %v2292_v45 = vmul.f32 0.00390625, %v2291_v43 }
 0x2ed   : > { %5227 = vmatprep.subr.mxu0 %v2292_v45 }
 0x2ee   : > { %5228 = vmatpush3.msra.mxu0 %v2292_v45  ;;  %v6613_v50 = vpop.permute.xlu0 %2882  ;;  %v6702_v45 = vpop.permute.xlu1 %3853 }
 0x2ef   : > { %5230 = vmatmul.mubr.msk.f32.vlgmr.msra.gmra.mrb[8].mxu0 %vm2301_vm11, %v6605_v46  ;;  %5246 = vmatprep.subr.bf16.mxu0 %v7273_v3 }
 0x2f0   : > { %5232 = vmatprep.mubr.msk.f32.mxu0 %vm2301_vm11, %v6610_v47  ;;  %5247 = vmatpush3.bf16.msra.mxu0 %v2596_v48 }
 0x2f1   : > { %5252 = vmatprep.subr.bf16.mxu0 %v7273_v3 }
 0x2f2   : > { %v3194_v55 = vpop.permute.xlu0 %3193 }
 0x2f3   : > { %5233 = vmatmul.mubr.msk.f32.gmra.mrb[10].mxu0 %vm2301_vm11, %v6625_v54  ;;  %v6631_v57 = vsel %vm966_vm8, %v3194_v55, %v3196_v16 }
 0x2f4   : > { %5248 = vmatprep.mubr.msk.bf16.mxu0 %vm5870_vm0, %v7273_v3 }
 0x2f6   : > { %v6642_v40 = vpop.permute.xlu0 %3197 }
 0x2f7   : > { %5249 = vmatmul.mubr.msk.bf16.vlgmr.msra.gmra.mrb[12].mxu0 %vm7326_vm12, %v6638_v53  ;;  %v6648_v63 = vsel %vm966_vm8, %v3196_v16, %v6642_v40  ;;  %v6696_v16 = vld [vmem:[%s7260_s1 + $0x8] sm:$0xf] }
 0x2f8   : > { %5253 = vmatpush3.bf16.msra.mxu0 %v2689_v38  ;;  %5254 = vmatprep.mubr.msk.bf16.mxu0 %vm5870_vm0, %v7273_v3 }
 0x2f9   : > { %5258 = vmatprep.subr.bf16.mxu0 %v7273_v3 }
 0x2fa   : > { %v3301_v2 = vpop.permute.xlu0 %3300 }
 0x2fb   : > { %v6654_v4 = vsel %vm7327_vm13, %v3299_v17, %v3301_v2  ;;  %v6658_v44 = vsel %vm7328_vm14, %v3301_v2, %v6615_v52  ;;  %vm7330_vm13 = vmmov %vm7329_vm15  ;;  %v2896_v17 = vsel %vm346_vm1, %v6613_v50, 0  ;;  %vm7332_vm14 = vcmask 900096  }
 0x2fe   : > { %v3404_v5 = vpop.permute.xlu0 %3403 }
 0x2ff   : > { %v6663_v10 = vsel %vm7329_vm15, %v3404_v5, %v3406_v56  ;;  %vm7333_vm15 = vmmov %vm7332_vm14 }
 0x302   : > { %v6672_v18 = vpop.permute.xlu0 %3407 }
 0x303   : > { %5255 = vmatmul.mubr.msk.bf16.vlgmr.msra.gmra.mrb[12].mxu0 %vm7326_vm12, %v6668_v11  ;;  %v6678_v22 = vsel %vm7330_vm13, %v3406_v56, %v6672_v18  ;;  %v3957_v56 = vpop.permute.xlu1 %3956 }
 0x304   : > { %5259 = vmatpush3.bf16.msra.mxu0 %v2791_v13  ;;  %5260 = vmatprep.mubr.msk.bf16.mxu0 %vm5870_vm0, %v7273_v3  ;;  %v6726_v13 = vld [vmem:[%s7260_s1 + $0xc] sm:$0xf] }
 0x305   : > { %5264 = vmatprep.subr.bf16.mxu0 %v7273_v3 }
 0x306   : > { %v3552_v23 = vpop.permute.xlu0 %3551 }
 0x307   : > { %v6684_v29 = vsel %vm339_vm2, %v3550_v1, %v3552_v23  ;;  %v6688_v25 = vsel %vm339_vm2, %v3552_v23, %v6660_v8  ;;  %vm7331_vm2 = vmmov %vm7326_vm12  ;;  %v3001_v23 = vsel %vm346_vm1, %v6573_v32, 0 }
 0x308   : > { %vm7342_vm12 = vmmov %vm7331_vm2 }
 0x309   : > { %vm7343_vm13 = vmmov %vm7331_vm2 }
 0x30a   : > { %v3745_v34 = vpop.permute.xlu0 %3744 }
 0x30b   : > { %v6691_v36 = vsel %vm538_vm4, %v3745_v34, %v3747_v20 }
 0x30e   : > { %v6700_v43 = vpop.permute.xlu0 %3748 }
 0x30f   : > { %5261 = vmatmul.mubr.msk.bf16.vlgmr.msra.gmra.mrb[12].mxu0 %vm7331_vm2, %v6696_v16  ;;  %v6708_v48 = vsel %vm538_vm4, %v3747_v20, %v6700_v43  ;;  %v4060_v20 = vpop.permute.xlu1 %4059  ;;  %vm7334_vm4 = vmmov %vm7331_vm2 }
 0x310   : > { %5265 = vmatpush3.bf16.msra.mxu0 %v2896_v17  ;;  %5266 = vmatprep.mubr.msk.bf16.mxu0 %vm5870_vm0, %v7273_v3 }
 0x311   : > { %5270 = vmatprep.subr.bf16.mxu0 %v7273_v3 }
 0x312   : > { %v3852_v55 = vpop.permute.xlu0 %3851 }
 0x313   : > { %v6714_v38 = vsel %vm7332_vm14, %v3850_v30, %v3852_v55  ;;  %v6718_v1 = vsel %vm7333_vm15, %v3852_v55, %v6702_v45  ;;  %v6741_v17 = vpop.permute.xlu1 %4063  ;;  %vm7345_vm14 = vcmask 744448   ;;  %vm7347_vm15 = vmmov %vm7331_vm2 }
 0x316   : > { %v3955_v2 = vpop.permute.xlu0 %3954 }
 0x317   : > { %v6721_v5 = vsel %vm752_vm6, %v3955_v2, %v3957_v56  ;;  %v4167_v54 = vpop.permute.xlu1 %4166 }
 0x31a   : > { %v6730_v34 = vpop.permute.xlu0 %3958 }
 0x31b   : > { %5267 = vmatmul.mubr.msk.bf16.vlgmr.msra.gmra.mrb[12].mxu0 %vm7334_vm4, %v6726_v13  ;;  %v6736_v30 = vsel %vm752_vm6, %v3957_v56, %v6730_v34  ;;  %vm7337_vm6 = vmmov %vm7331_vm2  ;;  %v3972_v0 = vsel %vm346_vm1, %v6730_v34, 0 }
 0x31c   : > { %5271 = vmatpush3.bf16.msra.mxu0 %v3001_v23  ;;  %5272 = vmatprep.mubr.msk.bf16.mxu0 %vm5870_vm0, %v7273_v3  ;;  %v6756_v23 = vld [vmem:[%s7260_s1 + $0x10] sm:$0xf]  ;;  %vm7348_vm4 = vmmov %vm7331_vm2 }
 0x31d   : > { %5276 = vmatprep.subr.bf16.mxu0 %v7273_v3  ;;  %v3106_v3 = vsel %vm346_vm1, %v6588_v39, 0  ;;  %v3211_v39 = vsel %vm346_vm1, %v6642_v40, 0  ;;  %v6798_v40 = vld [vmem:[%s7260_s1 + $0x1c] sm:$0xf] }
 0x31e   : > { %v4062_v55 = vpop.permute.xlu0 %4061 }
 0x31f   : > { %v6744_v32 = vsel %vm859_vm7, %v4060_v20, %v4062_v55  ;;  %v6748_v2 = vsel %vm859_vm7, %v4062_v55, %v6741_v17  ;;  %v6774_v55 = vld [vmem:[%s7260_s1 + $0x14] sm:$0xf]  ;;  %vm7340_vm7 = vmmov %vm7331_vm2 }
 0x320   : > { %7335 = vst [vmem:[#allocation18_spill] sm:$0xff] %v6744_v32 }
 0x322   : > { %v4165_v7 = vpop.permute.xlu0 %4164 }
 0x323   : > { %v6751_v56 = vsel %vm966_vm8, %v4165_v7, %v4167_v54  ;;  %v7339_v7 = vmov 0.0  }
 0x324   : > { %7336 = vst [vmem:[#allocation19_spill] sm:$0xff] %v6751_v56 }
 0x326   : > { %v6760_v47 = vpop.permute.xlu0 %4168 }
 0x327   : > { %5273 = vmatmul.mubr.msk.bf16.vlgmr.msra.gmra.mrb[12].mxu0 %vm7337_vm6, %v6756_v23  ;;  %v6766_v20 = vsel %vm966_vm8, %v4167_v54, %v6760_v47  ;;  %v3316_v54 = vsel %vm346_vm1, %v6615_v52, 0  ;;  %vm7341_vm8 = vmmov %vm7331_vm2  ;;  %v6810_v52 = vld [vmem:[%s7260_s1 + $0x20] sm:$0xf]  ;;  %v4182_v34 = vsel %vm346_vm1, %v6760_v47, 0 }
 0x328   : > { %7338 = vst [vmem:[#allocation20_spill] sm:$0xff] %v6766_v20  ;;  %5277 = vmatpush3.bf16.msra.mxu0 %v3106_v3  ;;  %5278 = vmatprep.mubr.msk.bf16.mxu0 %vm5870_vm0, %v7339_v7  ;;  %v6786_v3 = vld [vmem:[%s7260_s1 + $0x18] sm:$0xf]  ;;  %vm7349_vm6 = vmmov %vm7331_vm2 }
 0x329   : > { %5282 = vmatprep.subr.bf16.mxu0 %v7339_v7 }
 0x333   : > { %5279 = vmatmul.mubr.msk.bf16.vlgmr.msra.gmra.mrb[12].mxu0 %vm7340_vm7, %v6774_v55  ;;  %vm7351_vm7 = vmmov %vm7331_vm2 }
 0x334   : > { %5283 = vmatpush3.bf16.msra.mxu0 %v3211_v39  ;;  %5284 = vmatprep.mubr.msk.bf16.mxu0 %vm5870_vm0, %v7339_v7  ;;  %v3421_v39 = vsel %vm346_vm1, %v6672_v18, 0  ;;  %v6822_v18 = vld [vmem:[%s7260_s1 + $0x28] sm:$0xf] }
 0x335   : > { %5288 = vmatprep.subr.bf16.mxu0 %v7339_v7 }
 0x33f   : > { %5285 = vmatmul.mubr.msk.bf16.vlgmr.msra.gmra.mrb[12].mxu0 %vm7341_vm8, %v6786_v3  ;;  %vm7353_vm8 = vmmov %vm7331_vm2 }
 0x340   : > { %5289 = vmatpush3.bf16.msra.mxu0 %v3316_v54  ;;  %5290 = vmatprep.mubr.msk.bf16.mxu0 %vm5870_vm0, %v7339_v7  ;;  %v3567_v54 = vsel %vm346_vm1, %v6660_v8, 0  ;;  %v4270_v8 = vpop.permute.xlu1 %4269 }
 0x341   : > { %5294 = vmatprep.subr.bf16.mxu0 %v7339_v7 }
 0x34b   : > { %5291 = vmatmul.mubr.msk.bf16.vlgmr.msra.gmra.mrb[12].mxu0 %vm7342_vm12, %v6798_v40  ;;  %vm7356_vm12 = vmmov %vm7331_vm2 }
 0x34c   : > { %5295 = vmatpush3.bf16.msra.mxu0 %v3421_v39  ;;  %5296 = vmatprep.mubr.msk.bf16.mxu0 %vm5870_vm0, %v7339_v7  ;;  %v3660_v39 = vsel %vm346_vm1, %v6503_v15, 0  ;;  %v6840_v15 = vld [vmem:[%s7260_s1 + $0x24] sm:$0xf] }
 0x34d   : > { %5300 = vmatprep.subr.bf16.mxu0 %v7339_v7 }
 0x357   : > { %5297 = vmatmul.mubr.msk.bf16.vlgmr.msra.gmra.mrb[12].mxu0 %vm7343_vm13, %v6810_v52  ;;  %vm7360_vm13 = vmmov %vm7331_vm2 }
 0x358   : > { %5301 = vmatpush3.bf16.msra.mxu0 %v3567_v54  ;;  %5302 = vmatprep.mubr.msk.bf16.mxu0 %vm5870_vm0, %v7339_v7  ;;  %v6831_v54 = vpop.permute.xlu0 %4271 }
 0x359   : > { %5306 = vmatprep.subr.bf16.mxu0 %v7339_v7  ;;  %7344 = vst [vmem:[#allocation21_spill] sm:$0xff] %v6831_v54  ;;  %v6835_v46 = vsel %vm7345_vm14, %v4270_v8, %v6831_v54  ;;  %v2427_v8 = vld [vmem:[%s7263_s4] sm:$0xff]  ;;  %vm7368_vm14 = vcmask 900096  }
 0x35a   : > { %7346 = vst [vmem:[#allocation22_spill] sm:$0xff] %v6835_v46  ;;  %5243 = vmatprep.mubr.msk.f32.mxu1 %vm2287_vm10, %v2427_v8 }
 0x35c   : > { %v6914_v47 = vpop.permute.xlu0 %4374 }
 0x35d   : > { %7357 = vst [vmem:[#allocation27_spill] sm:$0xff] %v6914_v47 }
 0x35f   : > { %5303 = vmatmul.mubr.msk.bf16.vlgmr.msra.gmra.mrb[16].mxu0 %vm7331_vm2, %v6822_v18 }
 0x360   : > { %5307 = vmatpush3.bf16.msra.mxu0 %v3660_v39  ;;  %5308 = vmatprep.mubr.msk.bf16.mxu0 %vm5870_vm0, %v7339_v7  ;;  %v3762_v39 = vsel %vm346_vm1, %v6700_v43, 0  ;;  %v3867_v43 = vsel %vm346_vm1, %v6702_v45, 0  ;;  %v6880_v45 = vld [vmem:[%s7260_s1 + $0x34] sm:$0xf] }
 0x361   : > { %5312 = vmatprep.subr.bf16.mxu0 %v7339_v7  ;;  %7350 = vst [vmem:[#allocation23_spill] sm:$0xff] %v6880_v45 }
 0x36b   : > { %5309 = vmatmul.mubr.msk.bf16.vlgmr.msra.gmra.mrb[16].mxu0 %vm7347_vm15, %v6840_v15 }
 0x36c   : > { %5313 = vmatpush3.bf16.msra.mxu0 %v3762_v39  ;;  %5314 = vmatprep.mubr.msk.bf16.mxu0 %vm5870_vm0, %v7339_v7  ;;  %v6868_v39 = vld [vmem:[%s7260_s1 + $0x30] sm:$0xf] }
 0x36d   : > { %5318 = vmatprep.subr.bf16.mxu0 %v7339_v7 }
 0x377   : > { %5315 = vmatmul.mubr.msk.bf16.vlgmr.msra.gmra.mrb[16].mxu0 %vm7348_vm4, %v6856_v59  ;;  %vm7370_vm4 = vmmov %vm7368_vm14 }
 0x378   : > { %5319 = vmatpush3.bf16.msra.mxu0 %v3867_v43  ;;  %5320 = vmatprep.mubr.msk.bf16.mxu0 %vm5870_vm0, %v7339_v7  ;;  %v4077_v43 = vsel %vm346_vm1, %v6741_v17, 0  ;;  %v6901_v17 = vpop.permute.xlu1 %4273 }
 0x379   : > { %5324 = vmatprep.subr.bf16.mxu0 %v7339_v7  ;;  %7354 = vst [vmem:[#allocation25_spill] sm:$0xff] %v6901_v17  ;;  %v4287_v62 = vsel %vm346_vm1, %v6901_v17, 0 }
 0x383   : > { %5321 = vmatmul.mubr.msk.bf16.vlgmr.msra.gmra.mrb[16].mxu0 %vm7349_vm6, %v6868_v39 }
 0x384   : > { %5325 = vmatpush3.bf16.msra.mxu0 %v3972_v0  ;;  %5326 = vmatprep.mubr.msk.bf16.mxu0 %vm5870_vm0, %v7339_v7  ;;  %v6892_v0 = vld [vmem:[%s7260_s1 + $0x38] sm:$0xf] }
 0x385   : > { %5330 = vmatprep.subr.bf16.mxu0 %v7339_v7  ;;  %7352 = vst [vmem:[#allocation24_spill] sm:$0xff] %v6892_v0 }
 0x38f   : > { %5327 = vmatmul.mubr.msk.bf16.vlgmr.msra.gmra.mrb[16].mxu0 %vm7351_vm7, %v6880_v45 }
 0x390   : > { %5331 = vmatpush3.bf16.msra.mxu0 %v4077_v43  ;;  %5332 = vmatprep.mubr.msk.bf16.mxu0 %vm5870_vm0, %v7339_v7  ;;  %v6906_v43 = vld [vmem:[%s7260_s1 + $0x3c] sm:$0xf] }
 0x391   : > { %5336 = vmatprep.subr.bf16.mxu0 %v7339_v7  ;;  %7355 = vst [vmem:[#allocation26_spill] sm:$0xff] %v6906_v43 }
 0x39b   : > { %5333 = vmatmul.mubr.msk.bf16.vlgmr.msra.gmra.mrb[16].mxu0 %vm7353_vm8, %v6892_v0 }
 0x39c   : > { %5337 = vmatpush3.bf16.msra.mxu0 %v4182_v34  ;;  %5338 = vmatprep.mubr.msk.bf16.mxu0 %vm5870_vm0, %v7339_v7  ;;  %v6917_v34 = vpop.permute.xlu0 %4378 }
 0x39d   : > { %5342 = vmatprep.subr.bf16.mxu0 %v7339_v7  ;;  %7358 = vst [vmem:[#allocation28_spill] sm:$0xff] %v6917_v34  ;;  %v4392_v35 = vsel %vm346_vm1, %v6917_v34, 0 }
 0x3a7   : > { %5339 = vmatmul.mubr.msk.bf16.vlgmr.msra.gmra.mrb[16].mxu0 %vm7356_vm12, %v6906_v43 }
 0x3a8   : > { %5343 = vmatpush3.bf16.msra.mxu0 %v4287_v62  ;;  %5344 = vmatprep.mubr.msk.bf16.mxu0 %vm5870_vm0, %v7339_v7  ;;  %v6933_v62 = vld [vmem:[%s7260_s1 + $0x44] sm:$0xf] }
 0x3a9   : > { %5348 = vmatprep.subr.bf16.mxu0 %v7339_v7  ;;  %7361 = vst [vmem:[#allocation30_spill] sm:$0xff] %v6933_v62 }
 0x3b3   : > { %5345 = vmatmul.mubr.msk.bf16.vlgmr.msra.gmra.mrb[16].mxu0 %vm7360_vm13, %v6922_v61 }
 0x3b4   : > { %5349 = vmatpush3.bf16.msra.mxu0 %v4392_v35  ;;  %5350 = vmatprep.mubr.msk.bf16.mxu0 %vm5870_vm0, %v7339_v7  ;;  %v6946_v35 = vld [vmem:[%s7262_s3] sm:$0xff]  ;;  %vm7367_vm0 = vmmov %vm7331_vm2 }
 0x3b5   : > { %7363 = vst [vmem:[#allocation32_spill] sm:$0xff] %v6946_v35  ;;  %vm7369_vm15 = vmmov %vm7367_vm0 }
 0x3b6   : > { %vm7371_vm6 = vmmov %vm7367_vm0 }
 0x3b7   : > { %vm7372_vm7 = vmmov %vm7367_vm0 }
 0x3b8   : > { %vm7373_vm8 = vmmov %vm7367_vm0 }
 0x3b9   : > { %vm7374_vm12 = vmmov %vm7367_vm0 }
 0x3ba   : > { %vm7375_vm13 = vmmov %vm7367_vm0 }
 0x3bf   : > { %5351 = vmatmul.mubr.msk.bf16.vlgmr.msra.gmra.mrb[16].mxu0 %vm7331_vm2, %v6933_v62  ;;  %vm7376_vm2 = vmmov %vm7367_vm0 }
 0x3c0   : > { %5370 = vmatprep.mubr.msk.f32.mxu0 %vm2287_vm10, %v2427_v8  ;;  %v6958_v8 = vld [vmem:[%s7262_s3 + $0x10] sm:$0xff] }
 0x3c1   : > { %7365 = vst [vmem:[#allocation34_spill] sm:$0xff] %v6958_v8 }
 0x3c2   : > { %v5231_v7 = vpop.f32.mrb[8].mxu0 }
 0x3c3   : > { %v2386_v51 = vadd.f32 %v5231_v7, %v6940_v49  ;;  %v2380_v60 = vpop.f32.mrb[9].mxu0 }
 0x3c4   : > { %v2381_v58 = vadd.f32 %v2380_v60, %v6946_v35 }
 0x3c5   : > { %v2400_v62 = vsub.f32 0.0, %v2386_v51 }
 0x3c6   : > { %v2399_v61 = vsub.f32 0.0, %v2381_v58  ;;  %v5234_v47 = vpop.f32.mrb[10].mxu0 }
 0x3c7   : > { %v2405_v43 = vmul.f32 1.442695, %v2400_v62  ;;  %v2396_v34 = vadd.f32 %v5234_v47, %v6953_v9  ;;  %v2390_v7 = vpop.f32.mrb[11].mxu0 }
 0x3c8   : > { %v2403_v49 = vmul.f32 1.442695, %v2399_v61  ;;  %v2391_v60 = vadd.f32 %v2390_v7, %v6958_v8 }
 0x3c9   : > { %5736 = vpow2.f32 %v2405_v43  ;;  %v2402_v35 = vsub.f32 0.0, %v2396_v34 }
 0x3ca   : > { %5738 = vpow2.f32 %v2403_v49  ;;  %v2401_v46 = vsub.f32 0.0, %v2391_v60 }
 0x3cb   : > { %v2409_v0 = vmul.f32 1.442695, %v2402_v35 }
 0x3cc   : > { %v2407_v54 = vmul.f32 1.442695, %v2401_v46 }
 0x3cd   : > { %5740 = vpow2.f32 %v2409_v0 }
 0x3ce   : > { %5742 = vpow2.f32 %v2407_v54 }
 0x3d3   : > { %v5737_v17 = vpop.eup %5736 }
 0x3d4   : > { %v5739_v56 = vpop.eup %5738  ;;  %v2412_v20 = vadd.f32 1.0, %v5737_v17  ;;  %v7117_v17 = vld [vmem:[%s7264_s5] sm:$0xff] }
 0x3d5   : > { %v2411_v45 = vadd.f32 1.0, %v5739_v56 }
 0x3d6   : > { %5744 = vrcp.f32 %v2412_v20  ;;  %v6965_v20 = vld [vmem:[%s7263_s4 + $0x8] sm:$0xff] }
 0x3d7   : > { %v5741_v62 = vpop.eup %5740  ;;  %5746 = vrcp.f32 %v2411_v45  ;;  %v7112_v45 = vld [vmem:[%s7264_s5 + $0x8] sm:$0xff] }
 0x3d8   : > { %v5743_v47 = vpop.eup %5742  ;;  %v2414_v9 = vadd.f32 1.0, %v5741_v62 }
 0x3d9   : > { %v2413_v61 = vadd.f32 1.0, %v5743_v47 }
 0x3da   : > { %5748 = vrcp.f32 %v2414_v9  ;;  %v2683_v9 = vsel %vm346_vm1, %v6356_v14, 0  ;;  %v2884_v14 = vsel %vm7370_vm4, %v6550_v27, %v6556_v28  ;;  %vm7379_vm4 = vmmov %vm7367_vm0 }
 0x3db   : > { %5750 = vrcp.f32 %v2413_v61 }
 0x3e0   : > { %v5745_v43 = vpop.eup %5744 }
 0x3e1   : > { %v5747_v7 = vpop.eup %5746  ;;  %v2424_v49 = vmul.f32 %v5745_v43, %v2386_v51  ;;  %v2590_v51 = vsel %vm346_vm1, %v6508_v19, 0  ;;  %v2785_v19 = vsel %vm346_vm1, %v6530_v24, 0  ;;  %v2995_v24 = vsel %vm346_vm1, %v6567_v31, 0 }
 0x3e2   : > { %v2423_v8 = vmul.f32 %v5747_v7, %v2381_v58  ;;  %v7366_v58 = vmov 0   ;;  %v3205_v31 = vsel %vm346_vm1, %v6631_v57, 0  ;;  %v3561_v57 = vsel %vm346_vm1, %v6684_v29, 0  ;;  %v7385_v29 = vld [vmem:[#allocation19_spill] sm:$0xff] }
 0x3e4   : > { %v5749_v35 = vpop.eup %5748  ;;  %v5373_v46 = vpack.c.bf16 %v2424_v49, %v2423_v8 }
 0x3e5   : > { %v5751_v0 = vpop.eup %5750  ;;  %v2426_v54 = vmul.f32 %v5749_v35, %v2396_v34 }
 0x3e6   : > { %v2425_v32 = vmul.f32 %v5751_v0, %v2391_v60  ;;  %5374 = vmatprep.subr.bf16.mxu1 %v5373_v46 }
 0x3e7   : > { %5376 = vmatpush3.bf16.msra.mxu1 %v5373_v46 }
 0x3e8   : > { %v5377_v56 = vpack.c.bf16 %v2426_v54, %v2425_v32 }
 0x3ea   : > { %5378 = vmatprep.subr.bf16.mxu1 %v5377_v56 }
 0x3eb   : > { %5380 = vmatpush3.bf16.msra.mxu1 %v5377_v56 }
 0x3ec   : > { %4939 = vmatprep.subr.msk.bf16.mxu1 %vm346_vm1, %v6515_v21  ;;  %v2885_v21 = vsel %vm7368_vm14, %v6556_v28, %v6613_v50  ;;  %v3415_v50 = vsel %vm346_vm1, %v6663_v10, 0  ;;  %vm7377_vm14 = vmmov %vm7367_vm0  ;;  %v7384_v10 = vld [vmem:[#allocation20_spill] sm:$0xff] }
 0x3ee   : > { %5244 = vmatmul.mubr.msk.f32.vlgmr.msra.gmra.mrb[8].mxu1 %vm2287_vm10, %v6965_v20 }
 0x3ef   : > { %2599 = vmatpush1.bf16.msra.mxu1 %v2590_v51  ;;  %2630 = vmatprep.mubr.bf16.mxu1 %v7366_v58 }
 0x3f0   : > { %4942 = vmatprep.subr.msk.bf16.mxu1 %vm346_vm1, %v6362_v42  ;;  %v2890_v42 = vsel %vm346_vm1, %v2884_v14, 0 }
 0x3f2   : > { %4940 = vmatmul.mubr.msk.bf16.vlgmr.msra.gmra.mrb[12].mxu1 %vm7367_vm0, %v6638_v53  ;;  %v3654_v53 = vsel %vm346_vm1, %v6498_v12, 0  ;;  %v3861_v12 = vsel %vm346_vm1, %v6714_v38, 0 }
 0x3f3   : > { %2692 = vmatpush1.bf16.msra.mxu1 %v2683_v9  ;;  %2723 = vmatprep.mubr.bf16.mxu1 %v7366_v58 }
 0x3f4   : > { %4946 = vmatprep.subr.msk.bf16.mxu1 %vm346_vm1, %v6540_v26  ;;  %v3100_v26 = vsel %vm346_vm1, %v6586_v37, 0  ;;  %v3310_v37 = vsel %vm346_vm1, %v6654_v4, 0  ;;  %v7381_v4 = vld [vmem:[#allocation18_spill] sm:$0xff] }
 0x3fe   : > { %4943 = vmatmul.mubr.msk.bf16.vlgmr.msra.gmra.mrb[12].mxu1 %vm7369_vm15, %v6668_v11  ;;  %vm7378_vm15 = vmmov %vm7367_vm0 }
 0x3ff   : > { %2794 = vmatpush1.bf16.msra.mxu1 %v2785_v19  ;;  %2825 = vmatprep.mubr.bf16.mxu1 %v7366_v58 }
 0x400   : > { %4950 = vmatprep.subr.msk.bf16.mxu1 %vm346_vm1, %v2885_v21 }
 0x40a   : > { %4947 = vmatmul.mubr.msk.bf16.vlgmr.msra.gmra.mrb[12].mxu1 %vm7371_vm6, %v6696_v16  ;;  %vm7380_vm6 = vmmov %vm7367_vm0  ;;  %v7386_v16 = vld [vmem:[#allocation25_spill] sm:$0xff] }
 0x40b   : > { %2899 = vmatpush1.bf16.msra.mxu1 %v2890_v42  ;;  %2930 = vmatprep.mubr.bf16.mxu1 %v7366_v58 }
 0x40c   : > { %4954 = vmatprep.subr.msk.bf16.mxu1 %vm346_vm1, %v6577_v33 }
 0x416   : > { %4951 = vmatmul.mubr.msk.bf16.vlgmr.msra.gmra.mrb[12].mxu1 %vm7372_vm7, %v6726_v13  ;;  %vm7383_vm7 = vmmov %vm7367_vm0  ;;  %v4377_v13 = vpop.permute.xlu1 %4376 }
 0x417   : > { %3004 = vmatpush1.bf16.msra.mxu1 %v2995_v24  ;;  %3035 = vmatprep.mubr.bf16.mxu1 %v7366_v58 }
 0x418   : > { %4958 = vmatprep.subr.msk.bf16.mxu1 %vm346_vm1, %v6594_v41 }
 0x422   : > { %4955 = vmatmul.mubr.msk.bf16.vlgmr.msra.gmra.mrb[12].mxu1 %vm7373_vm8, %v6756_v23  ;;  %vm7388_vm8 = vcmask 744448  }
 0x423   : > { %3109 = vmatpush1.bf16.msra.mxu1 %v3100_v26  ;;  %3140 = vmatprep.mubr.bf16.mxu1 %v7366_v58  ;;  %v7403_v26 = vld [vmem:[#allocation7_spill] sm:$0xff] }
 0x424   : > { %4962 = vmatprep.subr.msk.bf16.mxu1 %vm346_vm1, %v6648_v63  ;;  %v3756_v63 = vsel %vm346_vm1, %v6691_v36, 0 }
 0x42a   : > { %v7015_v27 = vpop.f32.mrb[12].mxu0 }
 0x42b   : > { %v5298_v28 = vpop.f32.mrb[13].mxu0 }
 0x42c   : > { %v3501_v33 = vpop.f32.mrb[14].mxu0  ;;  %v1297_v28 = vpack.c.bf16 %v7403_v26, %v7403_v26 }
 0x42d   : > { %v5299_v41 = vpop.f32.mrb[15].mxu0 }
 0x42e   : > { %4959 = vmatmul.mubr.msk.bf16.vlgmr.msra.gmra.mrb[12].mxu1 %vm7374_vm12, %v6774_v55  ;;  %vm7390_vm12 = vmmov %vm7367_vm0  ;;  %v7394_v55 = vld [vmem:[#allocation26_spill] sm:$0xff] }
 0x42f   : > { %3214 = vmatpush1.bf16.msra.mxu1 %v3205_v31  ;;  %3245 = vmatprep.mubr.bf16.mxu1 %v7366_v58  ;;  %v7404_v31 = vld [vmem:[#allocation9_spill] sm:$0xff]  ;;  %v7405_v41 = vld [vmem:[#allocation6_spill] sm:$0xff] }
 0x430   : > { %4966 = vmatprep.subr.msk.bf16.mxu1 %vm346_vm1, %v6658_v44  ;;  %v7382_v44 = vld [vmem:[#allocation23_spill] sm:$0xff]  ;;  %v1298_v33 = vpack.c.bf16 %v7404_v31, %v7404_v31 }
 0x43a   : > { %4963 = vmatmul.mubr.msk.bf16.vlgmr.msra.gmra.mrb[12].mxu1 %vm7375_vm13, %v6786_v3  ;;  %vm7393_vm13 = vcmask 736256   ;;  %v7396_v3 = vld [vmem:[#allocation27_spill] sm:$0xff] }
 0x43b   : > { %3319 = vmatpush1.bf16.msra.mxu1 %v3310_v37  ;;  %3350 = vmatprep.mubr.bf16.mxu1 %v7366_v58  ;;  %v1299_v37 = vpack.c.bf16 %v7405_v41, %v7405_v41 }
 0x43c   : > { %4970 = vmatprep.subr.msk.bf16.mxu1 %vm346_vm1, %v6678_v22 }
 0x446   : > { %4967 = vmatmul.mubr.msk.bf16.vlgmr.msra.gmra.mrb[12].mxu1 %vm7376_vm2, %v6798_v40  ;;  %vm7395_vm2 = vmmov %vm7367_vm0 }
 0x447   : > { %3424 = vmatpush1.bf16.msra.mxu1 %v3415_v50  ;;  %3455 = vmatprep.mubr.bf16.mxu1 %v7366_v58  ;;  %v7406_v50 = vld [vmem:[#allocation5_spill] sm:$0xff] }
 0x448   : > { %4976 = vmatprep.subr.msk.bf16.mxu1 %vm346_vm1, %v6688_v25  ;;  %v4176_v25 = vsel %vm346_vm1, %v7385_v29, 0 }
 0x452   : > { %4971 = vmatmul.mubr.msk.bf16.vlgmr.msra.gmra.mrb[12].mxu1 %vm7367_vm0, %v6810_v52  ;;  %vm7397_vm0 = vmmov %vm7393_vm13 }
 0x453   : > { %3570 = vmatpush1.bf16.msra.mxu1 %v3561_v57  ;;  %3601 = vmatprep.mubr.bf16.mxu1 %v7366_v58  ;;  %v4380_v40 = vsel %vm7397_vm0, %v7396_v3, %v4377_v13  ;;  %v2282_v57 = vpack.c.bf16 %v7406_v50, %v7406_v50 }
 0x454   : > { %4979 = vmatprep.subr.msk.bf16.mxu1 %vm346_vm1, %v6519_v6  ;;  %v3966_v6 = vsel %vm346_vm1, %v6721_v5, 0  ;;  %v7389_v5 = vld [vmem:[#allocation24_spill] sm:$0xff]  ;;  %v4386_v52 = vsel %vm346_vm1, %v4380_v40, 0 }
 0x45a   : > { %4977 = vmatmul.mubr.msk.bf16.vlgmr.msra.gmra.mrb[16].mxu1 %vm7377_vm14, %v6822_v18  ;;  %v7398_v18 = vld [vmem:[#allocation29_spill] sm:$0xff]  ;;  %vm7399_vm14 = vmmov %vm7395_vm2 }
 0x45b   : > { %3663 = vmatpush1.bf16.msra.mxu1 %v3654_v53  ;;  %3694 = vmatprep.mubr.bf16.mxu1 %v7366_v58  ;;  %v7407_v53 = vld [vmem:[#allocation8_spill] sm:$0xff] }
 0x45c   : > { %4983 = vmatprep.subr.msk.bf16.mxu1 %vm346_vm1, %v6708_v48  ;;  %v7387_v48 = vld [vmem:[#allocation21_spill] sm:$0xff] }
 0x45d   : > { %v4276_v38 = vsel %vm7388_vm8, %v7387_v48, %v7386_v16 }
 0x466   : > { %4980 = vmatmul.mubr.msk.bf16.vlgmr.msra.gmra.mrb[16].mxu1 %vm7378_vm15, %v6840_v15  ;;  %v7400_v15 = vld [vmem:[#allocation30_spill] sm:$0xff]  ;;  %vm7401_vm15 = vmmov %vm7395_vm2 }
 0x467   : > { %3765 = vmatpush1.bf16.msra.mxu1 %v3756_v63  ;;  %3796 = vmatprep.mubr.bf16.mxu1 %v7366_v58  ;;  %v2280_v63 = vpack.c.bf16 %v7407_v53, %v7407_v53 }
 0x468   : > { %4987 = vmatprep.subr.msk.bf16.mxu1 %vm346_vm1, %v6718_v1 }
 0x472   : > { %4984 = vmatmul.mubr.msk.bf16.vlgmr.msra.gmra.mrb[16].mxu1 %vm7379_vm4, %v6856_v59  ;;  %v4071_v59 = vsel %vm346_vm1, %v7381_v4, 0 }
 0x473   : > { %3870 = vmatpush1.bf16.msra.mxu1 %v3861_v12  ;;  %3901 = vmatprep.mubr.bf16.mxu1 %v7366_v58  ;;  %v7408_v12 = vld [vmem:[#allocation10_spill] sm:$0xff] }
 0x474   : > { %4991 = vmatprep.subr.msk.bf16.mxu1 %vm346_vm1, %v6736_v30  ;;  %v7391_v30 = vld [vmem:[#allocation22_spill] sm:$0xff] }
 0x475   : > { %v4281_v32 = vsel %vm346_vm1, %v7391_v30, 0 }
 0x47e   : > { %4988 = vmatmul.mubr.msk.bf16.vlgmr.msra.gmra.mrb[16].mxu1 %vm7380_vm6, %v6868_v39  ;;  %v7402_v39 = vld [vmem:[#allocation14_spill] sm:$0xff] }
 0x47f   : > { %3975 = vmatpush1.bf16.msra.mxu1 %v3966_v6  ;;  %4006 = vmatprep.mubr.bf16.mxu1 %v7366_v58  ;;  %v2281_v6 = vpack.c.bf16 %v7408_v12, %v7408_v12 }
 0x480   : > { %4995 = vmatprep.subr.msk.bf16.mxu1 %vm346_vm1, %v6748_v2  ;;  %v7392_v2 = vld [vmem:[#allocation28_spill] sm:$0xff] }
 0x481   : > { %v4381_v23 = vsel %vm7393_vm13, %v4377_v13, %v7392_v2 }
 0x48a   : > { %4992 = vmatmul.mubr.msk.bf16.vlgmr.msra.gmra.mrb[16].mxu1 %vm7383_vm7, %v7382_v44 }
 0x48b   : > { %4080 = vmatpush1.bf16.msra.mxu1 %v4071_v59  ;;  %4111 = vmatprep.mubr.bf16.mxu1 %v7366_v58 }
 0x48c   : > { %4999 = vmatprep.subr.msk.bf16.mxu1 %vm346_vm1, %v7384_v10 }
 0x492   : > { %v7080_v11 = vpop.f32.mrb[16].mxu0 }
 0x493   : > { %v5352_v22 = vpop.f32.mrb[17].mxu0  ;;  %v4480_v13 = vsub.f32 0.0, %v7080_v11 }
 0x494   : > { %v4472_v36 = vpop.f32.mrb[18].mxu0 }
 0x495   : > { %v5353_v1 = vpop.f32.mrb[19].mxu0 }
 0x496   : > { %4996 = vmatmul.mubr.msk.bf16.vlgmr.msra.gmra.mrb[16].mxu1 %vm7390_vm12, %v7389_v5  ;;  %v3509_v5 = vsub.f32 0.0, %v7015_v27 }
 0x497   : > { %4185 = vmatpush1.bf16.msra.mxu1 %v4176_v25  ;;  %4216 = vmatprep.mubr.bf16.mxu1 %v7366_v58 }
 0x498   : > { %5003 = vmatprep.subr.msk.bf16.mxu1 %vm346_vm1, %v4276_v38  ;;  %v3514_v30 = vmul.f32 1.442695, %v3509_v5  ;;  %v7416_v5 = vld [vmem:[#allocation32_spill] sm:$0xff] }
 0x4a2   : > { %5000 = vmatmul.mubr.msk.bf16.vlgmr.msra.gmra.mrb[16].mxu1 %vm7395_vm2, %v7394_v55 }
 0x4a3   : > { %4290 = vmatpush1.bf16.msra.mxu1 %v4281_v32  ;;  %4321 = vmatprep.mubr.bf16.mxu1 %v7366_v58  ;;  %v4485_v32 = vmul.f32 1.442695, %v4480_v13 }
 0x4a4   : > { %5007 = vmatprep.subr.msk.bf16.mxu1 %vm346_vm1, %v4381_v23  ;;  %vm2555_vm1 = vcmask 257024  }
 0x4ae   : > { %5004 = vmatmul.mubr.msk.bf16.vlgmr.msra.gmra.mrb[16].mxu1 %vm7399_vm14, %v7398_v18 }
 0x4af   : > { %4395 = vmatpush1.bf16.msra.mxu1 %v4386_v52  ;;  %4426 = vmatprep.mubr.bf16.mxu1 %v7366_v58 }
 0x4ba   : > { %5008 = vmatmul.mubr.msk.bf16.vlgmr.msra.gmra.mrb[16].mxu1 %vm7401_vm15, %v7400_v15 }
 0x4bb   : > { %5356 = vmatprep.mubr.msk.f32.mxu1 %vm2301_vm11, %v7402_v39 }
 0x4c1   : > { %v5245_v34 = vpop.f32.mrb[8].mxu1 }
 0x4c2   : > { %v2509_v8 = vadd.f32 %v5245_v34, %v7112_v45  ;;  %v2503_v60 = vpop.f32.mrb[9].mxu1 }
 0x4c3   : > { %v2504_v62 = vadd.f32 %v2503_v60, %v7117_v17 }
 0x4c5   : > { %v2512_v47 = vmax.f32 %v2504_v62, %v2509_v8 }
 0x4c7   : > { %v2513_v61 = vsub.f32 %v2504_v62, %v2512_v47  ;;  %v2516_v43 = vsub.f32 %v2509_v8, %v2512_v47 }
 0x4c9   : > { %v2514_v7 = vmul.f32 1.442695, %v2513_v61  ;;  %v2517_v49 = vmul.f32 1.442695, %v2516_v43 }
 0x4cb   : > { %5752 = vpow2.f32 %v2514_v7 }
 0x4cc   : > { %5754 = vpow2.f32 %v2517_v49 }
 0x4d5   : > { %v5753_v35 = vpop.eup %5752 }
 0x4d6   : > { %v5755_v46 = vpop.eup %5754 }
 0x4d7   : > { %v2519_v0 = vadd.f32 %v5755_v46, %v5753_v35 }
 0x4d9   : > { %5756 = vrcp.f32 %v2519_v0 }
 0x4da   : > { %5758 = vpow2.f32 %v3514_v30 }
 0x4db   : > { %5760 = vpow2.f32 %v4485_v32 }
 0x4e3   : > { %v5757_v54 = vpop.eup %5756 }
 0x4e4   : > { %v2521_v56 = vmul.f32 %v5757_v54, %v5753_v35  ;;  %v2523_v51 = vmul.f32 %v5757_v54, %v5755_v46  ;;  %v5759_v60 = vpop.eup %5758 }
 0x4e5   : > { %v5761_v47 = vpop.eup %5760  ;;  %v3518_v61 = vadd.f32 1.0, %v5759_v60 }
 0x4e6   : > { %v2522_v58 = vpack.c.bf16 %v2521_v56, %v2521_v56  ;;  %v2524_v9 = vpack.c.bf16 %v2523_v51, %v2523_v51  ;;  %v4489_v43 = vadd.f32 1.0, %v5761_v47 }
 0x4e8   : > { %2527 = vperm.xlu0 %5707, %v2522_v58  }
 0x4ec   : > { %2535 = vperm.xlu0 %5707, %v2524_v9  }
 0x525   : > { %v7121_v19 = vpop.f32.mrb[12].mxu1 }
 0x526   : > { %v7123_v21 = vpop.f32.mrb[13].mxu1  ;;  %v3507_v2 = vsub.f32 0.0, %v7121_v19 }
 0x527   : > { %v3461_v14 = vpop.f32.mrb[14].mxu1  ;;  %v3508_v23 = vsub.f32 0.0, %v7123_v21 }
 0x528   : > { %v3462_v42 = vpop.f32.mrb[15].mxu1  ;;  %v3510_v55 = vmul.f32 1.442695, %v3507_v2 }
 0x529   : > { %v3512_v3 = vmul.f32 1.442695, %v3508_v23 }
 0x52a   : > { %5762 = vpow2.f32 %v3510_v55  ;;  %v7417_v55 = vld [vmem:[#allocation33_spill] sm:$0xff] }
 0x52b   : > { %5764 = vpow2.f32 %v3512_v3 }
 0x534   : > { %v5763_v7 = vpop.eup %5762 }
 0x535   : > { %v5765_v49 = vpop.eup %5764  ;;  %v3516_v35 = vadd.f32 1.0, %v5763_v7 }
 0x536   : > { %v3517_v46 = vadd.f32 1.0, %v5765_v49 }
 0x567   : > { %v2528_v24 = vpop.permute.xlu0 %2527 }
 0x568   : > { %v2530_v4 = vmul.bf16 %v2528_v24, %v1297_v28  ;;  %v2531_v59 = vmul.bf16 %v2528_v24, %v1298_v33  ;;  %v2532_v10 = vmul.bf16 %v2528_v24, %v1299_v37 }
 0x56b   : > { %v2536_v44 = vpop.permute.xlu0 %2535 }
 0x56c   : > { %v2538_v22 = vmul.bf16 %v2536_v44, %v2280_v63  ;;  %v2539_v29 = vmul.bf16 %v2536_v44, %v2281_v6  ;;  %v2540_v25 = vmul.bf16 %v2536_v44, %v2282_v57 }
 0x56e   : > { %v2541_v36 = vadd.bf16 %v2538_v22, %v2530_v4  ;;  %v2542_v16 = vadd.bf16 %v2539_v29, %v2531_v59  ;;  %v2543_v48 = vadd.bf16 %v2540_v25, %v2532_v10  ;;  %v7412_v29 = vld [vmem:[#allocation15_spill] sm:$0xff]  ;;  %v7413_v25 = vld [vmem:[#allocation16_spill] sm:$0xff] }
 0x570   : > { %v4935_v38 = vcombine.low %v2541_v36, %v2542_v16  ;;  %v4936_v1 = vcombine.low %v2543_v48, %v2543_v48  ;;  %v7414_v36 = vld [vmem:[#allocation17_spill] sm:$0xff]  ;;  %v7415_v48 = vld [vmem:[#allocation31_spill] sm:$0xff] }
 0x572   : > { %2554 = vst [vmem:[%s7140_s13] sm:$0xff] %v4935_v38  ;;  %2556 = vst.msk [vmem:[%s7140_s13 + $0x8] sm:$0xf] %vm2555_vm1, %v4936_v1 }
 0x58d   : > { %v4428_v40 = vpop.f32.mrb[16].mxu1 }
 0x58e   : > { %v4478_v52 = vsub.f32 0.0, %v4428_v40  ;;  %v4430_v18 = vpop.f32.mrb[17].mxu1 }
 0x58f   : > { %v4479_v15 = vsub.f32 0.0, %v4430_v18  ;;  %v4432_v39 = vpop.f32.mrb[18].mxu1 }
 0x590   : > { %v4481_v34 = vmul.f32 1.442695, %v4478_v52  ;;  %v4433_v8 = vpop.f32.mrb[19].mxu1 }
 0x591   : > { %v4483_v62 = vmul.f32 1.442695, %v4479_v15 }
 0x592   : > { %5766 = vpow2.f32 %v4481_v34 }
 0x593   : > { %5768 = vpow2.f32 %v4483_v62 }
 0x594   : > { %5770 = vrcp.f32 %v3518_v61 }
 0x595   : > { %5772 = vrcp.f32 %v4489_v43 }
 0x596   : > { %5774 = vrcp.f32 %v3516_v35 }
 0x597   : > { %5776 = vrcp.f32 %v3517_v46 }
 0x59c   : > { %v5767_v0 = vpop.eup %5766 }
 0x59d   : > { %v5769_v54 = vpop.eup %5768  ;;  %v4487_v56 = vadd.f32 1.0, %v5767_v0 }
 0x59e   : > { %v4488_v51 = vadd.f32 1.0, %v5769_v54  ;;  %v5771_v58 = vpop.eup %5770 }
 0x59f   : > { %5778 = vrcp.f32 %v4487_v56  ;;  %v5773_v9 = vpop.eup %5772  ;;  %v7150_v14 = vmul.f32 %v5771_v58, %v7015_v27 }
 0x5a0   : > { %5780 = vrcp.f32 %v4488_v51  ;;  %v7153_v42 = vmul.f32 %v5773_v9, %v7080_v11  ;;  %v5775_v24 = vpop.eup %5774 }
 0x5a1   : > { %v5777_v26 = vpop.eup %5776  ;;  %v7158_v41 = vmul.f32 %v5775_v24, %v7121_v19 }
 0x5a2   : > { %v4498_v33 = vadd.f32 %v7153_v42, %v7150_v14  ;;  %v7163_v50 = vmul.f32 %v5777_v26, %v7123_v21 }
 0x5a4   : > { %v4504_v63 = vsel %vm6468_vm3, %v4498_v33, 0.0 }
 0x5a5   : > { %v4506_v21 = vsel %vm2287_vm10, %v4504_v63, 0.0 }
 0x5a9   : > { %v5779_v28 = vpop.eup %5778 }
 0x5aa   : > { %v5781_v31 = vpop.eup %5780  ;;  %v7160_v37 = vmul.f32 %v5779_v28, %v4428_v40 }
 0x5ab   : > { %v7165_v27 = vmul.f32 %v5781_v31, %v4430_v18  ;;  %v7418_v18 = vld [vmem:[#allocation34_spill] sm:$0xff] }
 0x5ac   : > { %v4496_v11 = vadd.f32 %v7160_v37, %v7158_v41 }
 0x5ad   : > { %v4497_v57 = vadd.f32 %v7165_v27, %v7163_v50 }
 0x5ae   : > { %v4502_v19 = vsel %vm6464_vm5, %v4496_v11, 0.0 }
 0x5af   : > { %v4503_v4 = vsel %vm6474_vm9, %v4497_v57, 0.0 }
 0x5b0   : > { %v4505_v59 = vadd.f32 %v4503_v4, %v4502_v19 }
 0x5b2   : > { %v4507_v44 = vadd.f32 %v4506_v21, %v4505_v59 }
 0x5b4   : > { %4508 = vadd.xlane.f32.xlu1 %v4507_v44 }
 0x641   : > { %v4509_v10 = vpop.xlane.xlu1 %4508 }
 0x642   : > { %v4510_v22 = vmul.f32 0.00390625, %v4509_v10 }
 0x644   : > { %5354 = vmatprep.subr.mxu1 %v4510_v22 }
 0x645   : > { %5355 = vmatpush3.msra.mxu1 %v4510_v22 }
 0x646   : > { %5357 = vmatmul.mubr.msk.f32.vlgmr.msra.gmra.mrb[10].mxu1 %vm2301_vm11, %v7412_v29 }
 0x647   : > { %5359 = vmatprep.mubr.msk.f32.mxu1 %vm2301_vm11, %v7413_v25  ;;  %v3525_v25 = vpack.c.bf16 %v7158_v41, %v7158_v41 }
 0x64a   : > { %5360 = vmatmul.mubr.msk.f32.gmra.mrb[20].mxu1 %vm2301_vm11, %v7414_v36  ;;  %v3526_v36 = vpack.c.bf16 %v7163_v50, %v7163_v50 }
 0x719   : > { %v5358_v16 = vpop.f32.mrb[10].mxu1 }
 0x71a   : > { %v4603_v38 = vadd.f32 %v5358_v16, %v7415_v48  ;;  %v4597_v1 = vpop.f32.mrb[11].mxu1  ;;  %v3527_v16 = vpack.c.bf16 %v7150_v14, %v7150_v14  ;;  %v4499_v48 = vpack.c.bf16 %v7160_v37, %v7160_v37 }
 0x71b   : > { %v4598_v13 = vadd.f32 %v4597_v1, %v7416_v5  ;;  %v4501_v1 = vpack.c.bf16 %v7153_v42, %v7153_v42 }
 0x71c   : > { %v4617_v30 = vsub.f32 0.0, %v4603_v38 }
 0x71d   : > { %v4616_v32 = vsub.f32 0.0, %v4598_v13  ;;  %v5361_v2 = vpop.f32.mrb[20].mxu1 }
 0x71e   : > { %v4622_v23 = vmul.f32 1.442695, %v4617_v30  ;;  %v4613_v3 = vadd.f32 %v5361_v2, %v7417_v55  ;;  %v4607_v40 = vpop.f32.mrb[21].mxu1 }
 0x71f   : > { %v4620_v52 = vmul.f32 1.442695, %v4616_v32  ;;  %v4608_v15 = vadd.f32 %v4607_v40, %v7418_v18 }
 0x720   : > { %5782 = vpow2.f32 %v4622_v23  ;;  %v4619_v39 = vsub.f32 0.0, %v4613_v3 }
 0x721   : > { %5784 = vpow2.f32 %v4620_v52  ;;  %v4618_v34 = vsub.f32 0.0, %v4608_v15 }
 0x722   : > { %v4626_v8 = vmul.f32 1.442695, %v4619_v39 }
 0x723   : > { %v4624_v60 = vmul.f32 1.442695, %v4618_v34 }
 0x724   : > { %5786 = vpow2.f32 %v4626_v8 }
 0x725   : > { %5788 = vpow2.f32 %v4624_v60 }
 0x72a   : > { %v5783_v62 = vpop.eup %5782 }
 0x72b   : > { %v5785_v47 = vpop.eup %5784  ;;  %v4629_v61 = vadd.f32 1.0, %v5783_v62 }
 0x72c   : > { %v4628_v43 = vadd.f32 1.0, %v5785_v47 }
 0x72d   : > { %5790 = vrcp.f32 %v4629_v61 }
 0x72e   : > { %v5787_v7 = vpop.eup %5786  ;;  %5792 = vrcp.f32 %v4628_v43 }
 0x72f   : > { %v5789_v49 = vpop.eup %5788  ;;  %v4631_v35 = vadd.f32 1.0, %v5787_v7 }
 0x730   : > { %v4630_v46 = vadd.f32 1.0, %v5789_v49 }
 0x731   : > { %5794 = vrcp.f32 %v4631_v35 }
 0x732   : > { %5796 = vrcp.f32 %v4630_v46 }
 0x737   : > { %v5791_v0 = vpop.eup %5790 }
 0x738   : > { %v5793_v54 = vpop.eup %5792  ;;  %v4641_v56 = vmul.f32 %v5791_v0, %v4603_v38  ;;  %v4500_v38 = vpack.c.bf16 %v7165_v27, %v7165_v27 }
 0x739   : > { %v4640_v51 = vmul.f32 %v5793_v54, %v4598_v13 }
 0x73b   : > { %v5795_v58 = vpop.eup %5794  ;;  %v5381_v9 = vpack.c.bf16 %v4641_v56, %v4640_v51 }
 0x73c   : > { %v5797_v24 = vpop.eup %5796  ;;  %v4643_v26 = vmul.f32 %v5795_v58, %v4613_v3 }
 0x73d   : > { %v4642_v28 = vmul.f32 %v5797_v24, %v4608_v15  ;;  %5382 = vmatprep.subr.bf16.mxu0 %v5381_v9 }
 0x73e   : > { %5384 = vmatpush3.bf16.msra.mxu0 %v5381_v9 }
 0x73f   : > { %v5385_v31 = vpack.c.bf16 %v4643_v26, %v4642_v28 }
 0x741   : > { %5386 = vmatprep.subr.bf16.mxu0 %v5385_v31 }
 0x742   : > { %5388 = vmatpush3.bf16.msra.mxu0 %v5385_v31 }
 0x745   : > { %5371 = vmatmul.mubr.msk.f32.vlgmr.msra.gmra.mrb[20].mxu0 %vm2287_vm10, %v6965_v20 }
 0x818   : > { %v5372_v33 = vpop.f32.mrb[20].mxu0 }
 0x819   : > { %v4726_v11 = vadd.f32 %v5372_v33, %v7112_v45  ;;  %v4720_v57 = vpop.f32.mrb[21].mxu0 }
 0x81a   : > { %v4721_v53 = vadd.f32 %v4720_v57, %v7117_v17 }
 0x81c   : > { %v4729_v63 = vmax.f32 %v4721_v53, %v4726_v11 }
 0x81e   : > { %v4730_v12 = vsub.f32 %v4721_v53, %v4729_v63  ;;  %v4733_v19 = vsub.f32 %v4726_v11, %v4729_v63 }
 0x820   : > { %v4731_v6 = vmul.f32 1.442695, %v4730_v12  ;;  %v4734_v4 = vmul.f32 1.442695, %v4733_v19 }
 0x822   : > { %5798 = vpow2.f32 %v4731_v6 }
 0x823   : > { %5800 = vpow2.f32 %v4734_v4 }
 0x82c   : > { %v5799_v59 = vpop.eup %5798 }
 0x82d   : > { %v5801_v21 = vpop.eup %5800 }
 0x82e   : > { %v4736_v44 = vadd.f32 %v5801_v21, %v5799_v59 }
 0x830   : > { %5802 = vrcp.f32 %v4736_v44 }
 0x83a   : > { %v5803_v10 = vpop.eup %5802 }
 0x83b   : > { %v4738_v22 = vmul.f32 %v5803_v10, %v5799_v59  ;;  %v4740_v20 = vmul.f32 %v5803_v10, %v5801_v21 }
 0x83d   : > { %v4739_v29 = vpack.c.bf16 %v4738_v22, %v4738_v22  ;;  %v4741_v45 = vpack.c.bf16 %v4740_v20, %v4740_v20 }
 0x83f   : > { %4744 = vperm.xlu0 %5707, %v4739_v29  }
 0x843   : > { %4752 = vperm.xlu0 %5707, %v4741_v45  }
 0x8be   : > { %v4745_v17 = vpop.permute.xlu0 %4744 }
 0x8bf   : > { %v4747_v5 = vmul.bf16 %v4745_v17, %v3525_v25  ;;  %v4748_v13 = vmul.bf16 %v4745_v17, %v3526_v36  ;;  %v4749_v50 = vmul.bf16 %v4745_v17, %v3527_v16 }
 0x8c2   : > { %v4753_v41 = vpop.permute.xlu0 %4752 }
 0x8c3   : > { %v4755_v30 = vmul.bf16 %v4753_v41, %v4499_v48  ;;  %v4756_v14 = vmul.bf16 %v4753_v41, %v4500_v38  ;;  %v4757_v32 = vmul.bf16 %v4753_v41, %v4501_v1 }
 0x8c5   : > { %v4758_v37 = vadd.bf16 %v4755_v30, %v4747_v5  ;;  %v4759_v2 = vadd.bf16 %v4756_v14, %v4748_v13  ;;  %v4760_v23 = vadd.bf16 %v4757_v32, %v4749_v50 }
 0x8c7   : > { %v5016_v42 = vcombine.low %v4758_v37, %v4759_v2  ;;  %v5017_v27 = vcombine.low %v4760_v23, %v4760_v23 }
 0x8c9   : > { %5018 = vst [vmem:[%s7140_s13 + $0xc] sm:$0xff] %v5016_v42  ;;  %5019 = vst.msk [vmem:[%s7140_s13 + $0x14] sm:$0xf] %vm2555_vm1, %v5017_v27 }
 0x8ca   : > { %5817 = shalt.err (!%p5814_p3)
}
 0x8cb   : > { %s5818_s10 = scalar_lea.hbm %s7209_s18, 384  ;;  %s5822_s28 = scalar_lea.hbm %s7265_s6, 768 }
 0x8cc   : > { %p5819_p4 = scmp.ne.s32.totalorder %s7209_s18, %s5818_s10  ;;  %p5823_p9 = scmp.lt.u32.totalorder %s7209_s18, %s7265_s6 }
 0x8cd   : > { %p5824_p10 = scmp.lt.u32.totalorder %s5822_s28, %s5818_s10  ;;  %p5826_p12 = scmp.lt.u32.totalorder %s5818_s10, %s7209_s18 }
 0x8ce   : > { %p5820_p7 = pnand %p5819_p4, %p5956_p5 }
 0x8cf   : > { %p5825_p11 = por %p5824_p10, %p5823_p9 }
 0x8d0   : > { %p5821_p8 = pneg %p5820_p7 }
 0x8d1   : > { %p5827_p13 = por %p5826_p12, %p5825_p11 }
 0x8d3   : > { %p5828_p0 = pnand %p5827_p13, %p5821_p8 }
 0x8d5   : > { %5831 = shalt.err (!%p5828_p0)
}
 0x8d6   : > { %s5881_s14 = smov 192   ;;  %s5882_s16 = smov 12  }
 0x8d7   : > { %5654 = dma.vmem_to_hbm [thread:$0]  (%p5956_p5), %s7211_s15, 384, %s7209_s18, %s7218_s25, %s5881_s14, %s5881_s14, %s5882_s16  }
 0x8d8 PF: > { %p5660_p1 = scmp.ge.s32.totalorder %s5866_s24, 2  ;;  %s4804_s17 = sand.u32 1, %s5854_s21  }
 0x8d9   : > { %s4805_s19 = scalar_lea.sflag [#allocation3], %s4804_s17 }
 0x8da   : > { %p5657_p2 = pnand %p5660_p1, %p5960_p6 }
 0x8dc   : > { %5849 = dma.done.wait (!%p5657_p2), %s4805_s19, 384  }
 0x8dd   : > { %5851 = vsyncadd (!%p5657_p2), %s4805_s19, 4294966912  ;;  %p16_p3 = scmp.ge.s32.totalorder %s5943_s27, 4   ;;  %s7419_s21 = smov %s5858_s22 }
 0x8de   : > { %s7420_s22 = smov %s5862_s23  ;;  %s7421_s23 = smov %s5954_s30 }
 0x8df   : > { %s7422_s24 = smov %s5943_s27  ;;  %18 = sbr.rel (!%p16_p3) target bundleno = 3 (0x3), region = 100 }
 0x8e6   :  { %4810 = vsyncpa [#allocation3], 1 }
 0x8e7   :  { %4812 = vsyncpa [#allocation3 + $0x1], 1 }

</bundles_post_ra>
